<compile_context>
chip_gen: v7x
topology: tpu7x:2x2x1
jax: 0.10.0
libtpu: 0.0.40
codegen_flags: <defaults>
</compile_context>

<pallas_src>
import functools

import jax
import jax.numpy as jnp
from jax.experimental import pallas as pl
from jax.experimental.pallas import tpu as pltpu


def _channel_attention_kernel(x_ref, w1t_ref, w2t_ref, o_ref, sum_acc, max_acc,
                              *, inv_hw, tn, tail_valid):
    # x_ref  : (tn, C, thw) native dtype      w1t_ref : (C, Ch) native dtype
    # o_ref  : (tn, C) x.dtype                w2t_ref : (Ch, C) native dtype
    # sum_acc/max_acc : (tn, C) f32 running accumulators (resident across spatial axis)
    s = pl.program_id(1)
    last = pl.num_programs(1) - 1

    @pl.when(s == 0)
    def _init():
        sum_acc[...] = jnp.zeros(sum_acc.shape, jnp.float32)
        max_acc[...] = jnp.full(max_acc.shape, -jnp.inf, jnp.float32)

    def _accumulate_full():
        # Hot path: no mask, no extra tile copies; max stays in native dtype,
        # the sum reduce accumulates straight into f32.
        x = x_ref[...]
        sum_acc[...] += jnp.sum(x, axis=-1, dtype=jnp.float32)
        max_acc[...] = jnp.maximum(max_acc[...],
                                   jnp.max(x, axis=-1).astype(jnp.float32))

    if tail_valid is None:
        _accumulate_full()
    else:
        @pl.when(s < last)
        def _fast():
            _accumulate_full()

        @pl.when(s == last)
        def _masked_tail():
            # Cold path (one tile per batch block): the ragged tail reads OOB
            # garbage, which the where() neutralizes (0 for sum, -inf for max).
            x = x_ref[...].astype(jnp.float32)
            lane = jax.lax.broadcasted_iota(jnp.int32, x.shape, 2)
            valid = lane < tail_valid
            sum_acc[...] += jnp.sum(jnp.where(valid, x, 0.0), axis=-1)
            max_acc[...] = jnp.maximum(
                max_acc[...],
                jnp.max(jnp.where(valid, x, -jnp.inf), axis=-1))

    @pl.when(s == last)
    def _finalize():
        avg = sum_acc[...] * inv_hw                       # true-HW divisor
        mx = max_acc[...]
        pooled = jnp.concatenate([avg, mx], axis=0)       # (2*tn, C): one MLP pass
        h = jnp.dot(pooled, w1t_ref[...], preferred_element_type=jnp.float32)
        h = jnp.maximum(h, 0.0)                           # ReLU
        y = jnp.dot(h, w2t_ref[...], preferred_element_type=jnp.float32)
        o_ref[...] = jax.nn.sigmoid(y[:tn] + y[tn:]).astype(o_ref.dtype)


@functools.partial(jax.jit, static_argnames=("thw_target", "tn_target",
                                             "block_bytes_budget",
                                             "vmem_limit_bytes"))
def channel_attention(x, w1, w2, *, thw_target=1024, tn_target=8,
                      block_bytes_budget=2 * 1024 * 1024,
                      vmem_limit_bytes=48 * 1024 * 1024):
    """x: (N, C, H, W); w1: (C//ratio, C); w2: (C, C//ratio) (bias-free 1x1 convs).
    Returns (N, C, 1, 1) in x.dtype, matching the PyTorch module."""
    N, C, H, W = x.shape
    Ch = w1.shape[0]
    HW = H * W

    # Layout-preserving reshape (free under jit); x keeps its native dtype in HBM.
    x_r = x.reshape(N, C, HW)

    # Batch tile: sublane-aligned (multiple of 8) with >=2 batch grid steps when
    # possible (so v7x's two TensorCores both get work), otherwise the whole batch.
    tn_target = max(8, (tn_target // 8) * 8)
    tn = tn_target if N >= 2 * tn_target else N

    # Spatial (reduction) tile: multiple of 128, capped by a per-buffer VMEM
    # budget (~2 MiB double-buffered -> ~4 MiB), or the full HW in one block.
    itemsize = jnp.dtype(x.dtype).itemsize
    thw_cap = max(128, (block_bytes_budget // (tn * C * itemsize)) // 128 * 128)
    thw = min(max(128, (thw_target // 128) * 128), thw_cap)
    if HW <= thw:
        thw = HW
        tail_valid = None                                  # single full tile, no mask
    else:
        rem = HW % thw
        tail_valid = rem if rem else None                  # ragged last tile -> mask

    grid = (pl.cdiv(N, tn), pl.cdiv(HW, thw))

    # Pre-transpose weights (metadata under jit); keep the model's native dtype.
    w1t = jnp.asarray(w1).T                                # (C, Ch)
    w2t = jnp.asarray(w2).T                                # (Ch, C)

    kernel = functools.partial(_channel_attention_kernel,
                               inv_hw=1.0 / HW, tn=tn, tail_valid=tail_valid)

    out = pl.pallas_call(
        kernel,
        out_shape=jax.ShapeDtypeStruct((N, C), x.dtype),
        grid_spec=pltpu.PrefetchScalarGridSpec(
            num_scalar_prefetch=0,
            grid=grid,
            in_specs=[
                pl.BlockSpec((tn, C, thw), lambda n, s: (n, 0, s)),
                pl.BlockSpec((C, Ch), lambda n, s: (0, 0)),
                pl.BlockSpec((Ch, C), lambda n, s: (0, 0)),
            ],
            out_specs=pl.BlockSpec((tn, C), lambda n, s: (n, 0)),
            scratch_shapes=[
                pltpu.VMEM((tn, C), jnp.float32),          # running sum
                pltpu.VMEM((tn, C), jnp.float32),          # running max
            ],
        ),
        compiler_params=pltpu.CompilerParams(
            dimension_semantics=("parallel", "arbitrary"),
            vmem_limit_bytes=vmem_limit_bytes,
        ),
    )(x_r, w1t, w2t)

    return out.reshape(N, C, 1, 1)


def _reference(x, w1, w2):
    xf = x.astype(jnp.float32)
    avg = jnp.mean(xf, axis=(2, 3))                        # (N, C)
    mx = jnp.max(xf, axis=(2, 3))                          # (N, C)

    def mlp(v):
        return jnp.maximum(v @ w1.astype(jnp.float32).T, 0.0) @ w2.astype(jnp.float32).T

    return jax.nn.sigmoid(mlp(avg) + mlp(mx))[:, :, None, None]


if __name__ == "__main__":
    # Small but non-trivial shapes: N=16 gives two batch grid steps (tn=8),
    # HW=576 exercises both the single-block path and (with thw_target=256)
    # the streamed reduction with a ragged, masked last tile (576 = 2*256 + 64).
    N, C, H, W = 16, 32, 24, 24
    ratio = 16
    Ch = C // ratio

    key = jax.random.PRNGKey(0)
    kx, k1, k2 = jax.random.split(key, 3)

    x = jax.random.normal(kx, (N, C, H, W), dtype=jnp.float32)
    # Deterministic Kaiming-like init for the two bias-free 1x1 convs.
    w1 = jax.random.normal(k1, (Ch, C), dtype=jnp.float32) * (2.0 / C) ** 0.5
    w2 = jax.random.normal(k2, (C, Ch), dtype=jnp.float32) * (2.0 / Ch) ** 0.5

    ref = _reference(x, w1, w2)

    # Path 1: whole-HW single block (typical for late-stage CBAM feature maps).
    out1 = channel_attention(x, w1, w2)
    jax.block_until_ready(out1)
    assert out1.shape == (N, C, 1, 1)
    assert jnp.allclose(out1, ref, atol=1e-5, rtol=1e-5)

    # Path 2: streamed HW reduction, ragged masked last tile, 2-step batch axis.
    out2 = channel_attention(x, w1, w2, thw_target=256)
    jax.block_until_ready(out2)
    assert jnp.allclose(out2, ref, atol=1e-5, rtol=1e-5)

    # Path 3: bf16 input (native-dtype DMA + native-dtype max, f32 accumulation),
    # output comes back in x.dtype (bf16) like the PyTorch module.
    xb = x.astype(jnp.bfloat16)
    out3 = channel_attention(xb, w1, w2, thw_target=256)
    jax.block_until_ready(out3)
    refb = _reference(xb, w1, w2)
    assert out3.dtype == jnp.bfloat16
    assert jnp.allclose(out3.astype(jnp.float32), refb, atol=1e-2, rtol=1e-2)

    print("KERNEL_OK")
</pallas_src>

<mosaic_0001>
module attributes {stable_mosaic.version = 11 : i64} {
  func.func @_channel_attention_kernel(%arg0: i32, %arg1: i32, %arg2: memref<8x32x576xf32, #tpu.memory_space<vmem>>, %arg3: memref<32x2xf32, #tpu.memory_space<vmem>>, %arg4: memref<2x32xf32, #tpu.memory_space<vmem>>, %arg5: memref<8x32xf32, #tpu.memory_space<vmem>>, %arg6: memref<8x32xf32, #tpu.memory_space<vmem>>, %arg7: memref<8x32xf32, #tpu.memory_space<vmem>>) attributes {dimension_semantics = [#tpu.dimension_semantics<parallel>, #tpu.dimension_semantics<arbitrary>], iteration_bounds = array<i64: 2, 1>, scalar_prefetch = 0 : i64, scratch_operands = 2 : i64, tpu.core_type = #tpu.core_type<tc>, window_params = [{transform_indices = @transform_0, window_bounds = array<i64: 8, 32, 576>}, {pipeline_mode = #tpu.pipeline_mode<synchronous>, transform_indices = @transform_1, window_bounds = array<i64: 32, 2>}, {pipeline_mode = #tpu.pipeline_mode<synchronous>, transform_indices = @transform_2, window_bounds = array<i64: 2, 32>}, {transform_indices = @transform_3, window_bounds = array<i64: 8, 32>}]} {
    %c0_i32 = arith.constant 0 : i32
    %0 = arith.cmpi eq, %arg1, %c0_i32 : i32
    %1 = arith.extui %0 : i1 to i32
    %c0_i32_0 = arith.constant 0 : i32
    %2 = arith.cmpi ne, %1, %c0_i32_0 : i32
    scf.if %2 {
      %cst_14 = arith.constant 0.000000e+00 : f32
      %15 = vector.broadcast %cst_14 : f32 to vector<8x32xf32>
      %c0_15 = arith.constant 0 : index
      %c0_16 = arith.constant 0 : index
      %16 = vector.load %arg6[%c0_15, %c0_16] : memref<8x32xf32, #tpu.memory_space<vmem>>, vector<8x32xf32>
      tpu.vector_store %arg6[%c0_15, %c0_16], %15 {strides = array<i32>} : memref<8x32xf32, #tpu.memory_space<vmem>>, vector<8x32xf32>,
      %cst_17 = arith.constant 0xFF800000 : f32
      %17 = vector.broadcast %cst_17 : f32 to vector<8x32xf32>
      %c0_18 = arith.constant 0 : index
      %c0_19 = arith.constant 0 : index
      %18 = vector.load %arg7[%c0_18, %c0_19] : memref<8x32xf32, #tpu.memory_space<vmem>>, vector<8x32xf32>
      tpu.vector_store %arg7[%c0_18, %c0_19], %17 {strides = array<i32>} : memref<8x32xf32, #tpu.memory_space<vmem>>, vector<8x32xf32>,
    } else {
    }
    %c0 = arith.constant 0 : index
    %c0_1 = arith.constant 0 : index
    %c0_2 = arith.constant 0 : index
    %3 = vector.load %arg2[%c0, %c0_1, %c0_2] : memref<8x32x576xf32, #tpu.memory_space<vmem>>, vector<8x32x576xf32>
    %c0_3 = arith.constant 0 : index
    %c0_4 = arith.constant 0 : index
    %4 = vector.load %arg6[%c0_3, %c0_4] : memref<8x32xf32, #tpu.memory_space<vmem>>, vector<8x32xf32>
    %cst = arith.constant dense<0.000000e+00> : vector<8x32xf32>
    %5 = vector.multi_reduction <add>, %3, %cst [2] : vector<8x32x576xf32> to vector<8x32xf32>
    %6 = arith.addf %4, %5 : vector<8x32xf32>
    %c0_5 = arith.constant 0 : index
    %c0_6 = arith.constant 0 : index
    %7 = vector.load %arg6[%c0_5, %c0_6] : memref<8x32xf32, #tpu.memory_space<vmem>>, vector<8x32xf32>
    tpu.vector_store %arg6[%c0_5, %c0_6], %6 {strides = array<i32>} : memref<8x32xf32, #tpu.memory_space<vmem>>, vector<8x32xf32>,
    %c0_7 = arith.constant 0 : index
    %c0_8 = arith.constant 0 : index
    %8 = vector.load %arg7[%c0_7, %c0_8] : memref<8x32xf32, #tpu.memory_space<vmem>>, vector<8x32xf32>
    %cst_9 = arith.constant dense<0xFF800000> : vector<8x32xf32>
    %9 = vector.multi_reduction <maximumf>, %3, %cst_9 [2] : vector<8x32x576xf32> to vector<8x32xf32>
    %10 = arith.maximumf %8, %9 : vector<8x32xf32>
    %c0_10 = arith.constant 0 : index
    %c0_11 = arith.constant 0 : index
    %11 = vector.load %arg7[%c0_10, %c0_11] : memref<8x32xf32, #tpu.memory_space<vmem>>, vector<8x32xf32>
    tpu.vector_store %arg7[%c0_10, %c0_11], %10 {strides = array<i32>} : memref<8x32xf32, #tpu.memory_space<vmem>>, vector<8x32xf32>,
    %c0_i32_12 = arith.constant 0 : i32
    %12 = arith.cmpi eq, %arg1, %c0_i32_12 : i32
    %13 = arith.extui %12 : i1 to i32
    %c0_i32_13 = arith.constant 0 : i32
    %14 = arith.cmpi ne, %13, %c0_i32_13 : i32
    scf.if %14 {
      %c0_14 = arith.constant 0 : index
      %c0_15 = arith.constant 0 : index
      %15 = vector.load %arg6[%c0_14, %c0_15] : memref<8x32xf32, #tpu.memory_space<vmem>>, vector<8x32xf32>
      %cst_16 = arith.constant 0.00173611112 : f32
      %16 = vector.broadcast %cst_16 : f32 to vector<8x32xf32>
      %17 = arith.mulf %15, %16 : vector<8x32xf32>
      %c0_17 = arith.constant 0 : index
      %c0_18 = arith.constant 0 : index
      %18 = vector.load %arg7[%c0_17, %c0_18] : memref<8x32xf32, #tpu.memory_space<vmem>>, vector<8x32xf32>
      %19 = tpu.concatenate %17, %18 in 0 : vector<8x32xf32>, vector<8x32xf32> -> vector<16x32xf32>
      %c0_19 = arith.constant 0 : index
      %c0_20 = arith.constant 0 : index
      %20 = vector.load %arg3[%c0_19, %c0_20] : memref<32x2xf32, #tpu.memory_space<vmem>>, vector<32x2xf32>
      %cst_21 = arith.constant dense<0.000000e+00> : vector<16x2xf32>
      %21 = tpu.matmul %19, %20, %cst_21 {dimension_numbers = #tpu.dot_dimension_numbers<[1], [0], [0], [1], [0, 0, 1, 1], [], []>} : vector<16x32xf32>, vector<32x2xf32>, vector<16x2xf32> -> vector<16x2xf32>
      %cst_22 = arith.constant 0.000000e+00 : f32
      %22 = vector.broadcast %cst_22 : f32 to vector<16x2xf32>
      %23 = arith.maximumf %21, %22 : vector<16x2xf32>
      %c0_23 = arith.constant 0 : index
      %c0_24 = arith.constant 0 : index
      %24 = vector.load %arg4[%c0_23, %c0_24] : memref<2x32xf32, #tpu.memory_space<vmem>>, vector<2x32xf32>
      %cst_25 = arith.constant dense<0.000000e+00> : vector<16x32xf32>
      %25 = tpu.matmul %23, %24, %cst_25 {dimension_numbers = #tpu.dot_dimension_numbers<[1], [0], [0], [1], [0, 0, 1, 1], [], []>} : vector<16x2xf32>, vector<2x32xf32>, vector<16x32xf32> -> vector<16x32xf32>
      %26 = vector.extract_strided_slice %25 {offsets = [0, 0], sizes = [8, 32], strides = [1, 1]} : vector<16x32xf32> to vector<8x32xf32>
      %27 = vector.extract_strided_slice %25 {offsets = [8, 0], sizes = [8, 32], strides = [1, 1]} : vector<16x32xf32> to vector<8x32xf32>
      %28 = arith.addf %26, %27 : vector<8x32xf32>
      %29 = arith.negf %28 : vector<8x32xf32>
      %30 = math.exp %29 : vector<8x32xf32>
      %cst_26 = arith.constant 1.000000e+00 : f32
      %31 = vector.broadcast %cst_26 : f32 to vector<8x32xf32>
      %32 = arith.addf %31, %30 : vector<8x32xf32>
      %33 = arith.divf %31, %32 : vector<8x32xf32>
      %c0_27 = arith.constant 0 : index
      %c0_28 = arith.constant 0 : index
      %34 = vector.load %arg5[%c0_27, %c0_28] : memref<8x32xf32, #tpu.memory_space<vmem>>, vector<8x32xf32>
      tpu.vector_store %arg5[%c0_27, %c0_28], %33 {strides = array<i32>} : memref<8x32xf32, #tpu.memory_space<vmem>>, vector<8x32xf32>,
    } else {
    }
    return
  }
  func.func @transform_0(%arg0: i32, %arg1: i32) -> (i32, i32, i32) {
    %c0_i32 = arith.constant 0 : i32
    %c0_i32_0 = arith.constant 0 : i32
    return %arg0, %c0_i32, %arg1 : i32, i32, i32
  }
  func.func @transform_1(%arg0: i32, %arg1: i32) -> (i32, i32) {
    %c0_i32 = arith.constant 0 : i32
    %c0_i32_0 = arith.constant 0 : i32
    %c0_i32_1 = arith.constant 0 : i32
    return %c0_i32, %c0_i32_0 : i32, i32
  }
  func.func @transform_2(%arg0: i32, %arg1: i32) -> (i32, i32) {
    %c0_i32 = arith.constant 0 : i32
    %c0_i32_0 = arith.constant 0 : i32
    %c0_i32_1 = arith.constant 0 : i32
    return %c0_i32, %c0_i32_0 : i32, i32
  }
  func.func @transform_3(%arg0: i32, %arg1: i32) -> (i32, i32) {
    %c0_i32 = arith.constant 0 : i32
    %c0_i32_0 = arith.constant 0 : i32
    return %arg0, %c0_i32 : i32, i32
  }
}

</mosaic_0001>

<bundles_post_ra>
// kernel: channel_attention.1
= control target key start
LH: loop header
LB: loop body
LE: loop exit
PB: predicated region body
PF: predicated region fallthrough
CT: control target
= control target key end

     0   :  { %8 = vsyncpa [#allocation5], 0  ;;  %s2874_s0 = inlined_call_operand.vmem [shape: f32[16,32,576], index: 0, kind: input, shape index: {}]   ;;  %s2875_s1 = inlined_call_operand.vmem [shape: f32[32,2], index: 1, kind: input, shape index: {}]   ;;  %s2876_s2 = inlined_call_operand.vmem [shape: f32[2,32], index: 2, kind: input, shape index: {}]   ;;  %s2877_s3 = inlined_call_operand.hbm [shape: f32[16,32], index: 3, kind: output, shape index: {}]  }
   0x1   :  { %10 = vsyncpa [#allocation5 + $0x1], 0  ;;  %s1715_s12 = smov 0   ;;  %s1717_s13 = smov 0  }
   0x2   :  { %s1719_s14 = smov 0   ;;  %s1721_s15 = smov 0  }
   0x3   :  { %s1723_s16 = smov 0   ;;  %s1725_s17 = smov 0  }
   0x4 LB: > { %s1499_s18 = sadd.s32 4294967295, %s1690_s17   ;;  %s1500_s19 = sadd.s32 4294967294, %s1690_s17   ;;  %s1690_s17 = sphi %s1725_s17, %s16_s17   ;;  %s1686_s16 = sphi %s1723_s16, %s3064_s16   ;;  %s1682_s15 = sphi %s1721_s15, %s3063_s15   ;;  %s1678_s14 = sphi %s1719_s14, %s3062_s14   ;;  %s1674_s13 = sphi %s1717_s13, %s3061_s13   ;;  %s1670_s12 = sphi %s1715_s12, %s3060_s12  }
   0x5   : > { %s28_s20 = sadd.s32 1, %s1686_s16  ;;  %s105_s21 = sadd.s32 1, %s1678_s14 }
   0x6   : > { %p30_p0 = scmp.ge.s32.totalorder %s28_s20, 2  ;;  %p115_p1 = scmp.ne.s32.totalorder %s1678_s14, %s1674_s13 }
   0x7   : > { %p116_p2 = scmp.eq.s32.totalorder %s1499_s18, 1  ;;  %p121_p3 = scmp.ne.s32.totalorder %s1674_s13, %s1670_s12 }
   0x8   : > { %s3066_s20 = smov (%p30_p0, %s28_s20), 0  ;;  %p122_p5 = scmp.eq.s32.totalorder %s1500_s19, 1 }
   0x9   : > { %p1755_p4 = por %p116_p2, %p115_p1  ;;  %s102_s23 = ssub.s32 %s1686_s16, %s3066_s20 }
   0xa   : > { %p1503_p6 = scmp.ge.s32.totalorder %s1690_s17, 1  ;;  %p103_p7 = scmp.eq.s32.totalorder %s102_s23, 0 }
   0xb   : > { %p1762_p8 = por %p122_p5, %p121_p3  ;;  %p161_p9 = scmp.lt.s32.totalorder %s1690_s17, 3 }
   0xc   : > { %s1768_s25 = scalar_select %p103_p7, %s1678_s14, %s105_s21  }
   0xd   : > { %p162_p10 = pnand %p1503_p6, %p161_p9 }
   0xf   : > { %165 = sbr.rel (%p162_p10) target bundleno = 792 (0x318), region = 32 }
  0x16   : > { %s1505_s26 = sshll.u32 %s1682_s15, 3  ;;  %vm373_vm0 = vcmask 523264   ;;  %vm206_vm1 = vcmask 261120   ;;  %vm638_vm2 = vcmask 130112   ;;  %vm645_vm3 = vcmask 195712   ;;  %s187_s21 = sand.u32 1, %s1674_s13  }
  0x17   : > { %p192_p11 = scmp.lt.s32.totalorder %s1505_s26, 15  ;;  %vm652_vm4 = vcmask 261312   ;;  %vm787_vm5 = vcmask 1041409   ;;  %vm789_vm6 = vcmask 1042434   ;;  %vm791_vm7 = vcmask 1043459   ;;  %s1504_s23 = sshll.u32 %s187_s21, 3 }
  0x18   : > { %vm793_vm8 = vcmask 1044484   ;;  %vm795_vm9 = vcmask 1045509   ;;  %vm797_vm10 = vcmask 1046534   ;;  %vm799_vm11 = vcmask 1047559   ;;  %s1413_s5 = scalar_lea.sflag [#allocation5], %s187_s21 }
  0x19   : > { %s3068_s26 = smov (!%p192_p11, %s1505_s26), 15  ;;  %vm1325_vm12 = vcmask 1041408   ;;  %vm1318_vm13 = vcmask 15360  }
  0x1a   : > { %s1550_s27 = smul.u32 160, %s3068_s26  ;;  %s1514_s26 = sshll.u32 %s1682_s15, 7 }
  0x1b   : > { %s2826_s4 = scalar_lea.hbm %s2877_s3, %s1514_s26  ;;  %s1694_s15 = smov [#allocation4]  }
  0x1c   : > { %s1774_s30 = scalar_lea.vmem %s2874_s0, %s1550_s27  ;;  %s189_s27 = scalar_lea.vmem [#allocation4], %s1504_s23 }
  0x1d   : > { %v1777_v0 = vld [vmem:[%s1774_s30 + $0xa0] sm:$0xff]  ;;  %v1780_v1 = vld [vmem:[%s1774_s30 + $0xa8] sm:$0xff]  ;;  %v1783_v2 = vld [vmem:[%s1774_s30 + $0xb0] sm:$0xff]  ;;  %s1426_s28 = sshll.u32 %s189_s27, 4  ;;  %s1616_s7 = sshll.u32 %s1694_s15, 4  ;;  %s2828_s28 = int_to_ptr.vmem [resolvable:$true] %s1426_s28  ;;  %s1617_s7 = int_to_ptr.vmem [resolvable:$false] %s1616_s7 }
  0x1e   : > { %v1786_v3 = vld [vmem:[%s1774_s30 + $0xb8] sm:$0xff]  ;;  %v1789_v4 = vld [vmem:[%s1774_s30 + $0xc0] sm:$0xff]  ;;  %v399_v5 = vadd.f32 %v1780_v1, %v1777_v0  ;;  %v1797_v7 = vld [vmem:[%s1774_s30 + $0x8] sm:$0xff]  ;;  %s1612_s6 = scalar_lea.vmem %s2828_s28, 128  ;;  %s1618_s8 = scalar_lea.vmem %s1617_s7, 256 }
  0x1f   : > { %v1794_v6 = vld [vmem:[%s1774_s30] sm:$0xff]  ;;  %v1800_v8 = vld [vmem:[%s1774_s30 + $0x10] sm:$0xff]  ;;  %v1803_v9 = vld [vmem:[%s1774_s30 + $0x18] sm:$0xff]  ;;  %v402_v15 = vsel %vm373_vm0, %v1789_v4, 0.0  ;;  %p1613_p12 = scmp.ne.s32.totalorder %s2828_s28, %s1612_s6  ;;  %p1619_p1 = scmp.lt.s32.totalorder %s2828_s28, %s1617_s7 }
  0x20   : > { %v400_v10 = vadd.f32 %v399_v5, %v1783_v2  ;;  %v1807_v11 = vld [vmem:[%s1774_s30 + $0x20] sm:$0xff]  ;;  %v370_v12 = vadd.f32 %v1797_v7, %v1794_v6  ;;  %v1812_v13 = vld [vmem:[%s1774_s30 + $0xc8] sm:$0xff]  ;;  %v1815_v14 = vld [vmem:[%s1774_s30 + $0xd0] sm:$0xff]  ;;  %p1620_p2 = scmp.lt.s32.totalorder %s1618_s8, %s1612_s6 }
  0x21   : > { %v1820_v16 = vld [vmem:[%s1774_s30 + $0xd8] sm:$0xff]  ;;  %v1823_v17 = vld [vmem:[%s1774_s30 + $0xe0] sm:$0xff]  ;;  %v1826_v18 = vld [vmem:[%s1774_s30 + $0xe8] sm:$0xff]  ;;  %v406_v19 = vadd.f32 %v1815_v14, %v1812_v13  ;;  %v374_v25 = vsel %vm373_vm0, %v1807_v11, 0.0  ;;  %p1614_p13 = pnand %p1613_p12, %p1755_p4 }
  0x22   : > { %v401_v20 = vadd.f32 %v400_v10, %v1786_v3  ;;  %v371_v21 = vadd.f32 %v370_v12, %v1800_v8  ;;  %v1833_v22 = vld [vmem:[%s1774_s30 + $0x28] sm:$0xff]  ;;  %v1836_v23 = vld [vmem:[%s1774_s30 + $0x30] sm:$0xff]  ;;  %v1839_v24 = vld [vmem:[%s1774_s30 + $0x38] sm:$0xff]  ;;  %v409_v33 = vsel %vm373_vm0, %v1826_v18, 0.0  ;;  %p1621_p3 = por %p1620_p2, %p1619_p1 }
  0x23   : > { %v407_v26 = vadd.f32 %v406_v19, %v1820_v16  ;;  %v1845_v27 = vld [vmem:[%s1774_s30 + $0x40] sm:$0xff]  ;;  %v1848_v28 = vld [vmem:[%s1774_s30 + $0x48] sm:$0xff]  ;;  %v378_v29 = vadd.f32 %v1836_v23, %v1833_v22  ;;  %v1853_v30 = vld [vmem:[%s1774_s30 + $0xf0] sm:$0xff]  ;;  %p1615_p0 = pneg %p1614_p13 }
  0x24   : > { %v403_v31 = vadd.f32 %v402_v15, %v401_v20  ;;  %v372_v32 = vadd.f32 %v371_v21, %v1803_v9  ;;  %v1859_v34 = vld [vmem:[%s1774_s30 + $0xf8] sm:$0xff]  ;;  %v1862_v35 = vld [vmem:[%s1774_s30 + $0x100] sm:$0xff]  ;;  %v1865_v36 = vld [vmem:[%s1774_s30 + $0x108] sm:$0xff]  ;;  %v381_v44 = vsel %vm373_vm0, %v1848_v28, 0.0 }
  0x25   : > { %v408_v37 = vadd.f32 %v407_v26, %v1823_v17  ;;  %v379_v38 = vadd.f32 %v378_v29, %v1839_v24  ;;  %v1870_v39 = vld [vmem:[%s1774_s30 + $0x110] sm:$0xff]  ;;  %v413_v40 = vadd.f32 %v1859_v34, %v1853_v30  ;;  %v1878_v42 = vld [vmem:[%s1774_s30 + $0x58] sm:$0xff]  ;;  %v1883_v45 = vld [vmem:[%s1774_s30 + $0x60] sm:$0xff]  ;;  %p1622_p5 = pnand %p1621_p3, %p1615_p0 }
  0x26   : > { %v1875_v41 = vld [vmem:[%s1774_s30 + $0x50] sm:$0xff]  ;;  %404 = vadd.xlane.f32.xlu1 %v403_v31  ;;  %v375_v43 = vadd.f32 %v374_v25, %v372_v32  ;;  %v1886_v46 = vld [vmem:[%s1774_s30 + $0x68] sm:$0xff]  ;;  %v1902_v54 = vld [vmem:[%s1774_s30 + $0x178] sm:$0xff]  ;;  %v416_v55 = vsel %vm373_vm0, %v1870_v39, 0.0 }
  0x27   : > { %v1889_v47 = vld [vmem:[%s1774_s30 + $0x70] sm:$0xff]  ;;  %v385_v48 = vadd.f32 %v1878_v42, %v1875_v41  ;;  %v410_v49 = vadd.f32 %v409_v33, %v408_v37  ;;  %v380_v50 = vadd.f32 %v379_v38, %v1845_v27  ;;  %v414_v51 = vadd.f32 %v413_v40, %v1862_v35  ;;  %v1896_v52 = vld [vmem:[%s1774_s30 + $0x168] sm:$0xff]  ;;  %v1908_v57 = vld [vmem:[%s1774_s30 + $0x180] sm:$0xff] }
  0x28   : > { %v1899_v53 = vld [vmem:[%s1774_s30 + $0x170] sm:$0xff]  ;;  %376 = vadd.xlane.f32.xlu0 %v375_v43  ;;  %2940 = vst [vmem:[#allocation7_spill] sm:$0xff] %v1908_v57  ;;  %v1911_v58 = vld [vmem:[%s1774_s30 + $0x188] sm:$0xff]  ;;  %v1916_v60 = vld [vmem:[%s1774_s30 + $0x140] sm:$0xff]  ;;  %v388_v63 = vsel %vm373_vm0, %v1889_v47, 0.0 }
  0x29   : > { %v386_v56 = vadd.f32 %v385_v48, %v1883_v45  ;;  %2941 = vst [vmem:[#allocation8_spill] sm:$0xff] %v1911_v58  ;;  %v434_v59 = vadd.f32 %v1899_v53, %v1896_v52  ;;  %v382_v61 = vadd.f32 %v381_v44, %v380_v50  ;;  %v415_v62 = vadd.f32 %v414_v51, %v1865_v36  ;;  %v1922_v5 = vld [vmem:[%s1774_s30 + $0x148] sm:$0xff]  ;;  %v1925_v10 = vld [vmem:[%s1774_s30 + $0x150] sm:$0xff]  ;;  %v1928_v12 = vld [vmem:[%s1774_s30 + $0x158] sm:$0xff] }
  0x2a   : > { %411 = vadd.xlane.f32.xlu1 %v410_v49  ;;  %v1933_v20 = vld [vmem:[%s1774_s30 + $0x160] sm:$0xff]  ;;  %v427_v21 = vadd.f32 %v1922_v5, %v1916_v60  ;;  %v1938_v25 = vld [vmem:[%s1774_s30 + $0x118] sm:$0xff]  ;;  %v437_v31 = vsel %vm373_vm0, %v1911_v58, 0.0  ;;  %v1946_v32 = vld [vmem:[%s1774_s30 + $0x128] sm:$0xff] }
  0x2b   : > { %v387_v15 = vadd.f32 %v386_v56, %v1886_v46  ;;  %v435_v19 = vadd.f32 %v434_v59, %v1902_v54  ;;  %2942 = vst [vmem:[#allocation9_spill] sm:$0xff] %v1938_v25  ;;  %v1941_v26 = vld [vmem:[%s1774_s30 + $0x120] sm:$0xff]  ;;  %v417_v29 = vadd.f32 %v416_v55, %v415_v62  ;;  %2944 = vst [vmem:[#allocation11_spill] sm:$0xff] %v1946_v32  ;;  %v1949_v33 = vld [vmem:[%s1774_s30 + $0x130] sm:$0xff]  ;;  %v430_v51 = vsel %vm373_vm0, %v1933_v20, 0.0 }
  0x2c   : > { %2943 = vst [vmem:[#allocation10_spill] sm:$0xff] %v1941_v26  ;;  %2945 = vst [vmem:[#allocation12_spill] sm:$0xff] %v1949_v33  ;;  %v1952_v37 = vld [vmem:[%s1774_s30 + $0x138] sm:$0xff]  ;;  %v420_v38 = vadd.f32 %v1941_v26, %v1938_v25  ;;  %383 = vadd.xlane.f32.xlu0 %v382_v61  ;;  %v428_v44 = vadd.f32 %v427_v21, %v1925_v10  ;;  %v1962_v49 = vld [vmem:[%s1774_s30 + $0x80] sm:$0xff] }
  0x2d   : > { %2946 = vst [vmem:[#allocation13_spill] sm:$0xff] %v1952_v37  ;;  %v389_v40 = vadd.f32 %v388_v63, %v387_v15  ;;  %v436_v43 = vadd.f32 %v435_v19, %v1908_v57  ;;  %v1959_v48 = vld [vmem:[%s1774_s30 + $0x78] sm:$0xff]  ;;  %v1965_v50 = vld [vmem:[%s1774_s30 + $0x88] sm:$0xff]  ;;  %v1971_v56 = vld [vmem:[%s1774_s30 + $0x90] sm:$0xff]  ;;  %v806_v57 = vmax.f32 %v1794_v6, %v1797_v7 }
  0x2e   : > { %2947 = vst [vmem:[#allocation14_spill] sm:$0xff] %v1965_v50  ;;  %v421_v55 = vadd.f32 %v420_v38, %v1946_v32  ;;  %2948 = vst [vmem:[#allocation15_spill] sm:$0xff] %v1971_v56  ;;  %v392_v59 = vadd.f32 %v1962_v49, %v1959_v48  ;;  %v1976_v61 = vld [vmem:[%s1774_s30 + $0x1e0] sm:$0xff]  ;;  %418 = vadd.xlane.f32.xlu1 %v417_v29  ;;  %v429_v63 = vadd.f32 %v428_v44, %v1928_v12  ;;  %v1980_v15 = vld [vmem:[%s1774_s30 + $0x98] sm:$0xff] }
  0x2f   : > { %2949 = vst [vmem:[#allocation16_spill] sm:$0xff] %v1976_v61  ;;  %v438_v62 = vadd.f32 %v437_v31, %v436_v43  ;;  %2950 = vst [vmem:[#allocation17_spill] sm:$0xff] %v1980_v15  ;;  %v1983_v19 = vld [vmem:[%s1774_s30 + $0x1e8] sm:$0xff]  ;;  %v1986_v21 = vld [vmem:[%s1774_s30 + $0x1f0] sm:$0xff]  ;;  %v423_v32 = vsel %vm373_vm0, %v1952_v37, 0.0 }
  0x30   : > { %2951 = vst [vmem:[#allocation18_spill] sm:$0xff] %v1983_v19  ;;  %2952 = vst [vmem:[#allocation19_spill] sm:$0xff] %v1986_v21  ;;  %v422_v38 = vadd.f32 %v421_v55, %v1949_v33  ;;  %v393_v29 = vadd.f32 %v392_v59, %v1965_v50  ;;  %v1993_v31 = vld [vmem:[%s1774_s30 + $0x1f8] sm:$0xff]  ;;  %v455_v43 = vadd.f32 %v1983_v19, %v1976_v61  ;;  %v1998_v44 = vld [vmem:[%s1774_s30 + $0x190] sm:$0xff]  ;;  %390 = vadd.xlane.f32.xlu0 %v389_v40 }
  0x31   : > { %2953 = vst [vmem:[#allocation20_spill] sm:$0xff] %v1993_v31  ;;  %2954 = vst [vmem:[#allocation21_spill] sm:$0xff] %v1998_v44  ;;  %v2001_v25 = vld [vmem:[%s1774_s30 + $0x198] sm:$0xff]  ;;  %v431_v55 = vadd.f32 %v430_v51, %v429_v63  ;;  %v2004_v33 = vld [vmem:[%s1774_s30 + $0x200] sm:$0xff]  ;;  %v395_v19 = vsel %vm373_vm0, %v1980_v15, 0.0 }
  0x32   : > { %2955 = vst [vmem:[#allocation22_spill] sm:$0xff] %v2001_v25  ;;  %2956 = vst [vmem:[#allocation23_spill] sm:$0xff] %v2004_v33  ;;  %v2007_v37 = vld [vmem:[%s1774_s30 + $0x1a0] sm:$0xff]  ;;  %v2010_v26 = vld [vmem:[%s1774_s30 + $0x1a8] sm:$0xff]  ;;  %v441_v59 = vadd.f32 %v2001_v25, %v1998_v44  ;;  %v394_v61 = vadd.f32 %v393_v29, %v1971_v56  ;;  %v456_v40 = vadd.f32 %v455_v43, %v1986_v21  ;;  %439 = vadd.xlane.f32.xlu1 %v438_v62 }
  0x33   : > { %2957 = vst [vmem:[#allocation24_spill] sm:$0xff] %v2007_v37  ;;  %2958 = vst [vmem:[#allocation25_spill] sm:$0xff] %v2010_v26  ;;  %v2019_v51 = vld [vmem:[%s1774_s30 + $0x1b8] sm:$0xff]  ;;  %v2022_v63 = vld [vmem:[%s1774_s30 + $0x1c0] sm:$0xff]  ;;  %v424_v58 = vadd.f32 %v423_v32, %v422_v38  ;;  %v458_v62 = vsel %vm373_vm0, %v2004_v33, 0.0 }
  0x34   : > { %2959 = vst [vmem:[#allocation26_spill] sm:$0xff] %v2019_v51  ;;  %2960 = vst [vmem:[#allocation27_spill] sm:$0xff] %v2022_v63  ;;  %v2025_v50 = vld [vmem:[%s1774_s30 + $0x1c8] sm:$0xff]  ;;  %v2028_v44 = vld [vmem:[%s1774_s30 + $0x1b0] sm:$0xff]  ;;  %v442_v29 = vadd.f32 %v441_v59, %v2007_v37  ;;  %v448_v15 = vadd.f32 %v2022_v63, %v2019_v51  ;;  %v457_v21 = vadd.f32 %v456_v40, %v1993_v31  ;;  %432 = vadd.xlane.f32.xlu0 %v431_v55 }
  0x35   : > { %2961 = vst [vmem:[#allocation28_spill] sm:$0xff] %v2025_v50  ;;  %2962 = vst [vmem:[#allocation29_spill] sm:$0xff] %v2028_v44  ;;  %v2034_v43 = vld [vmem:[%s1774_s30 + $0x208] sm:$0xff]  ;;  %v2040_v32 = vld [vmem:[%s1774_s30 + $0x1d0] sm:$0xff]  ;;  %v396_v59 = vadd.f32 %v395_v19, %v394_v61  ;;  %v444_v61 = vsel %vm373_vm0, %v2028_v44, 0.0 }
  0x36   : > { %2963 = vst [vmem:[#allocation30_spill] sm:$0xff] %v2034_v43  ;;  %2964 = vst [vmem:[#allocation31_spill] sm:$0xff] %v2040_v32  ;;  %v2043_v38 = vld [vmem:[%s1774_s30 + $0x210] sm:$0xff]  ;;  %v2046_v56 = vld [vmem:[%s1774_s30 + $0x218] sm:$0xff]  ;;  %v443_v51 = vadd.f32 %v442_v29, %v2010_v26  ;;  %v449_v40 = vadd.f32 %v448_v15, %v2025_v50  ;;  %425 = vadd.xlane.f32.xlu1 %v424_v58  ;;  %v459_v50 = vadd.f32 %v458_v62, %v457_v21 }
  0x37   : > { %2965 = vst [vmem:[#allocation32_spill] sm:$0xff] %v2043_v38  ;;  %v2050_v63 = vld [vmem:[%s1774_s30 + $0x1d8] sm:$0xff]  ;;  %v462_v33 = vadd.f32 %v2043_v38, %v2034_v43  ;;  %v2056_v31 = vld [vmem:[%s1774_s30 + $0x280] sm:$0xff]  ;;  %v2059_v37 = vld [vmem:[%s1774_s30 + $0x288] sm:$0xff] }
  0x38   : > { %2966 = vst [vmem:[#allocation33_spill] sm:$0xff] %v2050_v63  ;;  %2967 = vst [vmem:[#allocation34_spill] sm:$0xff] %v2056_v31  ;;  %v2064_v19 = vld [vmem:[%s1774_s30 + $0x220] sm:$0xff]  ;;  %v2067_v55 = vld [vmem:[%s1774_s30 + $0x228] sm:$0xff]  ;;  %v483_v15 = vadd.f32 %v2059_v37, %v2056_v31  ;;  %v450_v26 = vadd.f32 %v449_v40, %v2040_v32  ;;  %v451_v58 = vsel %vm373_vm0, %v2050_v63, 0.0  ;;  %397 = vadd.xlane.f32.xlu0 %v396_v59 }
  0x39   : > { %2968 = vst [vmem:[#allocation35_spill] sm:$0xff] %v2059_v37  ;;  %v2070_v29 = vld [vmem:[%s1774_s30 + $0x290] sm:$0xff]  ;;  %v463_v43 = vadd.f32 %v462_v33, %v2046_v56  ;;  %v2080_v38 = vld [vmem:[%s1774_s30 + $0x238] sm:$0xff]  ;;  %v2083_v25 = vld [vmem:[%s1774_s30 + $0x240] sm:$0xff]  ;;  %v445_v32 = vadd.f32 %v444_v61, %v443_v51  ;;  %v465_v63 = vsel %vm373_vm0, %v2067_v55, 0.0 }
  0x3a   : > { %2969 = vst [vmem:[#allocation36_spill] sm:$0xff] %v2070_v29  ;;  %v2077_v44 = vld [vmem:[%s1774_s30 + $0x230] sm:$0xff]  ;;  %2971 = vst [vmem:[#allocation38_spill] sm:$0xff] %v2080_v38  ;;  %v2090_v21 = vld [vmem:[%s1774_s30 + $0x298] sm:$0xff]  ;;  %v484_v62 = vadd.f32 %v483_v15, %v2070_v29  ;;  %460 = vadd.xlane.f32.xlu1 %v459_v50 }
  0x3b   : > { %2970 = vst [vmem:[#allocation37_spill] sm:$0xff] %v2077_v44  ;;  %2972 = vst [vmem:[#allocation39_spill] sm:$0xff] %v2083_v25  ;;  %v469_v33 = vadd.f32 %v2080_v38, %v2077_v44  ;;  %v2096_v40 = vld [vmem:[%s1774_s30 + $0x2a8] sm:$0xff]  ;;  %v464_v31 = vadd.f32 %v463_v43, %v2064_v19  ;;  %v2100_v6 = vld [vmem:[%s1774_s30 + $0x2a0] sm:$0xff]  ;;  %v452_v43 = vadd.f32 %v451_v58, %v450_v26 }
  0x3c   : > { %2973 = vst [vmem:[#allocation40_spill] sm:$0xff] %v2096_v40  ;;  %v2103_v7 = vld [vmem:[%s1774_s30 + $0x2b0] sm:$0xff]  ;;  %v2108_v15 = vld [vmem:[%s1774_s30 + $0x248] sm:$0xff]  ;;  %v2112_v37 = vld [vmem:[%s1774_s30 + $0x2b8] sm:$0xff]  ;;  %v485_v59 = vadd.f32 %v484_v62, %v2090_v21  ;;  %v807_v44 = vmax.f32 %v806_v57, %v1800_v8  ;;  %v834_v38 = vmax.f32 %v1777_v0, %v1780_v1  ;;  %446 = vadd.xlane.f32.xlu0 %v445_v32 }
  0x3d   : > { %v470_v29 = vadd.f32 %v469_v33, %v2083_v25  ;;  %v490_v51 = vadd.f32 %v2103_v7, %v2096_v40  ;;  %v2118_v61 = vld [vmem:[%s1774_s30 + $0x250] sm:$0xff]  ;;  %v486_v33 = vsel %vm373_vm0, %v2100_v6, 0.0  ;;  %v2126_v25 = vld [vmem:[%s1774_s30 + $0x258] sm:$0xff]  ;;  %v2129_v40 = vld [vmem:[%s1774_s30 + $0x260] sm:$0xff]  ;;  %v466_v26 = vadd.f32 %v465_v63, %v464_v31 }
  0x3e   : > { %v813_v8 = vmax.f32 %v1833_v22, %v1836_v23  ;;  %v472_v0 = vsel %vm373_vm0, %v2118_v61, 0.0  ;;  %v2138_v1 = vld [vmem:[%s1774_s30 + $0x2c0] sm:$0xff]  ;;  %453 = vadd.xlane.f32.xlu1 %v452_v43  ;;  %v487_v57 = vadd.f32 %v486_v33, %v485_v59  ;;  %v808_v32 = vmax.f32 %v807_v44, %v1803_v9  ;;  %v2142_v62 = vld [vmem:[%s1774_s30 + $0x2c8] sm:$0xff]  ;;  %v2165_v43 = vld [vmem:[%s1774_s30 + $0x2d0] sm:$0xff] }
  0x3f   : > { %v471_v50 = vadd.f32 %v470_v29, %v2108_v15  ;;  %v491_v58 = vadd.f32 %v490_v51, %v2112_v37  ;;  %v835_v31 = vmax.f32 %v834_v38, %v1783_v2  ;;  %v476_v63 = vadd.f32 %v2129_v40, %v2126_v25  ;;  %v2150_v23 = vld [vmem:[%s1774_s30 + $0x268] sm:$0xff]  ;;  %v2153_v29 = vld [vmem:[%s1774_s30 + $0x320] sm:$0xff]  ;;  %v2168_v59 = vld [vmem:[%s1774_s30 + $0x2d8] sm:$0xff] }
  0x40   : > { %v809_v22 = vsel %vm373_vm0, %v1807_v11, -inf  ;;  %v2156_v51 = vld [vmem:[%s1774_s30 + $0x328] sm:$0xff]  ;;  %467 = vadd.xlane.f32.xlu0 %v466_v26  ;;  %v814_v2 = vmax.f32 %v813_v8, %v1839_v24  ;;  %v841_v38 = vmax.f32 %v1812_v13, %v1815_v14  ;;  %v493_v11 = vsel %vm373_vm0, %v2142_v62, 0.0  ;;  %v2177_v14 = vld [vmem:[%s1774_s30 + $0x270] sm:$0xff] }
  0x41   : > { %v473_v9 = vadd.f32 %v472_v0, %v471_v50  ;;  %v492_v44 = vadd.f32 %v491_v58, %v2138_v1  ;;  %v810_v33 = vmax.f32 %v808_v32, %v809_v22  ;;  %v836_v26 = vmax.f32 %v835_v31, %v1786_v3  ;;  %v2180_v58 = vld [vmem:[%s1774_s30 + $0x330] sm:$0xff]  ;;  %v2192_v31 = vld [vmem:[%s1774_s30 + $0x2e0] sm:$0xff] }
  0x42   : > { %488 = vadd.xlane.f32.xlu1 %v487_v57  ;;  %v477_v24 = vadd.f32 %v476_v63, %v2150_v23  ;;  %v511_v50 = vadd.f32 %v2156_v51, %v2153_v29  ;;  %v837_v13 = vsel %vm373_vm0, %v1789_v4, -inf  ;;  %v815_v0 = vmax.f32 %v814_v2, %v1845_v27  ;;  %v2184_v57 = vld [vmem:[%s1774_s30 + $0x278] sm:$0xff]  ;;  %v2195_v63 = vld [vmem:[%s1774_s30 + $0x348] sm:$0xff]  ;;  %v2198_v22 = vld [vmem:[%s1774_s30 + $0x350] sm:$0xff] }
  0x43   : > { %v494_v8 = vadd.f32 %v493_v11, %v492_v44  ;;  %v842_v3 = vmax.f32 %v841_v38, %v1820_v16  ;;  %v497_v32 = vadd.f32 %v2168_v59, %v2165_v43  ;;  %v816_v4 = vsel %vm373_vm0, %v1848_v28, -inf  ;;  %v2207_v2 = vld [vmem:[%s1774_s30 + $0x338] sm:$0xff] }
  0x44   : > { %474 = vadd.xlane.f32.xlu0 %v473_v9  ;;  %v838_v27 = vmax.f32 %v836_v26, %v837_v13  ;;  %v478_v9 = vadd.f32 %v477_v24, %v2177_v14  ;;  %v512_v16 = vadd.f32 %v511_v50, %v2180_v58  ;;  %v820_v44 = vmax.f32 %v1875_v41, %v1878_v42  ;;  %v2219_v42 = vld [vmem:[%s1774_s30 + $0x2e8] sm:$0xff]  ;;  %v2222_v50 = vld [vmem:[%s1774_s30 + $0x358] sm:$0xff] }
  0x45   : > { %v479_v28 = vsel %vm373_vm0, %v2184_v57, 0.0  ;;  %v817_v38 = vmax.f32 %v815_v0, %v816_v4  ;;  %v843_v11 = vmax.f32 %v842_v3, %v1823_v17  ;;  %v498_v26 = vadd.f32 %v497_v32, %v2192_v31  ;;  %v2226_v17 = vld [vmem:[%s1774_s30 + $0x2f0] sm:$0xff]  ;;  %v2234_v32 = vld [vmem:[%s1774_s30 + $0x2f8] sm:$0xff]  ;;  %v2237_v4 = vld [vmem:[%s1774_s30 + $0x300] sm:$0xff] }
  0x46   : > { %811 = vmax.xlane.f32.xlu1 %v810_v33  ;;  %v2211_v33 = vld [vmem:[%s1774_s30 + $0x340] sm:$0xff]  ;;  %v518_v24 = vadd.f32 %v2198_v22, %v2195_v63  ;;  %v844_v41 = vsel %vm373_vm0, %v1826_v18, -inf  ;;  %v480_v13 = vadd.f32 %v479_v28, %v478_v9  ;;  %v821_v0 = vmax.f32 %v820_v44, %v1883_v45 }
  0x47   : > { %2974 = vst [vmem:[#allocation41_spill] sm:$0xff] %v2211_v33  ;;  %v862_v3 = vmax.f32 %v1916_v60, %v1922_v5  ;;  %v514_v18 = vsel %vm373_vm0, %v2211_v33, 0.0  ;;  %v499_v9 = vadd.f32 %v498_v26, %v2219_v42  ;;  %v848_v45 = vmax.f32 %v1853_v30, %v1859_v34  ;;  %v2246_v5 = vld [vmem:[%s1774_s30 + $0x360] sm:$0xff]  ;;  %v2258_v34 = vld [vmem:[%s1774_s30 + $0x308] sm:$0xff] }
  0x48   : > { %495 = vadd.xlane.f32.xlu0 %v494_v8  ;;  %v513_v8 = vadd.f32 %v512_v16, %v2207_v2  ;;  %v519_v16 = vadd.f32 %v518_v24, %v2222_v50  ;;  %v500_v60 = vsel %vm373_vm0, %v2226_v17, 0.0  ;;  %v822_v28 = vmax.f32 %v821_v0, %v1886_v46  ;;  %v2261_v24 = vld [vmem:[%s1774_s30 + $0x3c0] sm:$0xff]  ;;  %v2273_v0 = vld [vmem:[%s1774_s30 + $0x370] sm:$0xff] }
  0x49   : > { %v504_v26 = vadd.f32 %v2237_v4, %v2234_v32  ;;  %v823_v30 = vsel %vm373_vm0, %v1889_v47, -inf  ;;  %v501_v46 = vadd.f32 %v500_v60, %v499_v9  ;;  %2975 = vst [vmem:[#allocation42_spill] sm:$0xff] %v2273_v0 }
  0x4a   : > { %839 = vmax.xlane.f32.xlu1 %v838_v27  ;;  %v845_v27 = vmax.f32 %v843_v11, %v844_v41  ;;  %v515_v44 = vadd.f32 %v514_v18, %v513_v8  ;;  %v863_v11 = vmax.f32 %v862_v3, %v1925_v10  ;;  %v2264_v41 = vld [vmem:[%s1774_s30 + $0x3c8] sm:$0xff]  ;;  %v849_v10 = vmax.f32 %v848_v45, %v1862_v35  ;;  %v2276_v3 = vld [vmem:[%s1774_s30 + $0x378] sm:$0xff] }
  0x4b   : > { %v869_v8 = vmax.f32 %v1896_v52, %v1899_v53  ;;  %v824_v18 = vmax.f32 %v822_v28, %v823_v30  ;;  %v505_v35 = vadd.f32 %v504_v26, %v2258_v34  ;;  %v539_v9 = vadd.f32 %v2264_v41, %v2261_v24  ;;  %v2285_v53 = vld [vmem:[%s1774_s30 + $0x310] sm:$0xff]  ;;  %v2303_v26 = vld [vmem:[%s1774_s30 + $0x3e8] sm:$0xff] }
  0x4c   : > { %818 = vmax.xlane.f32.xlu0 %v817_v38  ;;  %v2250_v38 = vld [vmem:[%s1774_s30 + $0x368] sm:$0xff]  ;;  %v865_v52 = vsel %vm373_vm0, %v1933_v20, -inf  ;;  %v850_v60 = vmax.f32 %v849_v10, %v1865_v36  ;;  %v525_v28 = vadd.f32 %v2276_v3, %v2273_v0  ;;  %v851_v20 = vsel %vm373_vm0, %v1870_v39, -inf  ;;  %2977 = vst [vmem:[#allocation44_spill] sm:$0xff] %v2303_v26  ;;  %v2306_v30 = vld [vmem:[%s1774_s30 + $0x3f0] sm:$0xff]  ;;  %v2315_v10 = vld [vmem:[%s1774_s30 + $0x3d8] sm:$0xff] }
  0x4d   : > { %v521_v47 = vsel %vm373_vm0, %v2250_v38, 0.0  ;;  %2978 = vst [vmem:[#allocation45_spill] sm:$0xff] %v2306_v30  ;;  %2979 = vst [vmem:[#allocation46_spill] sm:$0xff] %v2315_v10  ;;  %v2319_v0 = vld [vmem:[%s1774_s30 + $0x3e0] sm:$0xff] }
  0x4e   : > { %481 = vadd.xlane.f32.xlu1 %v480_v13  ;;  %v520_v13 = vadd.f32 %v519_v16, %v2246_v5  ;;  %v2288_v16 = vld [vmem:[%s1774_s30 + $0x3d0] sm:$0xff] }
  0x50   : > { %846 = vmax.xlane.f32.xlu0 %v845_v27  ;;  %v864_v27 = vmax.f32 %v863_v11, %v1928_v12  ;;  %v522_v45 = vadd.f32 %v521_v47, %v520_v13  ;;  %v870_v12 = vmax.f32 %v869_v8, %v1902_v54  ;;  %v2300_v11 = vld [vmem:[%s1774_s30 + $0x380] sm:$0xff]  ;;  %v540_v54 = vadd.f32 %v539_v9, %v2288_v16 }
  0x51   : > { %2976 = vst [vmem:[#allocation43_spill] sm:$0xff] %v2300_v11  ;;  %v827_v13 = vmax.f32 %v1959_v48, %v1962_v49  ;;  %v852_v8 = vmax.f32 %v850_v60, %v851_v20  ;;  %v2980_v47 = vld [vmem:[#allocation7_spill] sm:$0xff]  ;;  %v2327_v48 = vld [vmem:[%s1774_s30 + $0x388] sm:$0xff]  ;;  %v2330_v49 = vld [vmem:[%s1774_s30 + $0x3f8] sm:$0xff] }
  0x52   : > { %516 = vadd.xlane.f32.xlu1 %v515_v44  ;;  %v2292_v44 = vld [vmem:[%s1774_s30 + $0x318] sm:$0xff]  ;;  %v866_v36 = vmax.f32 %v864_v27, %v865_v52  ;;  %v871_v33 = vmax.f32 %v870_v12, %v2980_v47  ;;  %2981 = vst [vmem:[#allocation7_spill] sm:$0xff] %v2319_v0  ;;  %v546_v27 = vadd.f32 %v2306_v30, %v2303_v26  ;;  %2984 = vst [vmem:[#allocation47_spill] sm:$0xff] %v2330_v49  ;;  %v2334_v60 = vld [vmem:[%s1774_s30 + $0x390] sm:$0xff] }
  0x53   : > { %v507_v39 = vsel %vm373_vm0, %v2292_v44, 0.0  ;;  %2985 = vst [vmem:[#allocation48_spill] sm:$0xff] %v2334_v60  ;;  %v2986_v12 = vld [vmem:[#allocation14_spill] sm:$0xff]  ;;  %v2988_v47 = vld [vmem:[#allocation21_spill] sm:$0xff] }
  0x54   : > { %502 = vadd.xlane.f32.xlu0 %v501_v46  ;;  %v506_v46 = vadd.f32 %v505_v35, %v2285_v53  ;;  %v2982_v35 = vld [vmem:[#allocation8_spill] sm:$0xff]  ;;  %v2987_v20 = vld [vmem:[#allocation22_spill] sm:$0xff] }
  0x55   : > { %v872_v9 = vsel %vm373_vm0, %v2982_v35, -inf  ;;  %2983 = vst [vmem:[#allocation8_spill] sm:$0xff] %v2327_v48  ;;  %v876_v26 = vmax.f32 %v2988_v47, %v2987_v20  ;;  %v542_v35 = vsel %vm373_vm0, %v2319_v0, 0.0  ;;  %v2992_v47 = vld [vmem:[#allocation15_spill] sm:$0xff] }
  0x56   : > { %825 = vmax.xlane.f32.xlu1 %v824_v18  ;;  %v526_v18 = vadd.f32 %v525_v28, %v2300_v11  ;;  %v508_v52 = vadd.f32 %v507_v39, %v506_v46  ;;  %v828_v28 = vmax.f32 %v827_v13, %v2986_v12  ;;  %v873_v30 = vmax.f32 %v871_v33, %v872_v9  ;;  %v2989_v39 = vld [vmem:[#allocation10_spill] sm:$0xff]  ;;  %v2348_v12 = vld [vmem:[%s1774_s30 + $0x400] sm:$0xff]  ;;  %v2994_v33 = vld [vmem:[#allocation24_spill] sm:$0xff] }
  0x57   : > { %v547_v46 = vadd.f32 %v546_v27, %v2330_v49  ;;  %v528_v13 = vsel %vm373_vm0, %v2334_v60, 0.0  ;;  %2991 = vst [vmem:[#allocation14_spill] sm:$0xff] %v2348_v12  ;;  %v2995_v9 = vld [vmem:[#allocation32_spill] sm:$0xff]  ;;  %v2996_v27 = vld [vmem:[#allocation30_spill] sm:$0xff]  ;;  %v3003_v11 = vld [vmem:[#allocation25_spill] sm:$0xff] }
  0x58   : > { %523 = vadd.xlane.f32.xlu0 %v522_v45  ;;  %v541_v45 = vadd.f32 %v540_v54, %v2315_v10  ;;  %v2990_v54 = vld [vmem:[#allocation9_spill] sm:$0xff]  ;;  %v829_v0 = vmax.f32 %v828_v28, %v2992_v47  ;;  %v897_v49 = vmax.f32 %v2996_v27, %v2995_v9  ;;  %v2363_v60 = vld [vmem:[%s1774_s30 + $0x418] sm:$0xff]  ;;  %v3000_v28 = vld [vmem:[#allocation11_spill] sm:$0xff] }
  0x59   : > { %v855_v10 = vmax.f32 %v2990_v54, %v2989_v39  ;;  %v2360_v54 = vld [vmem:[%s1774_s30 + $0x410] sm:$0xff]  ;;  %2999 = vst [vmem:[#allocation10_spill] sm:$0xff] %v2363_v60  ;;  %v3002_v47 = vld [vmem:[#allocation16_spill] sm:$0xff]  ;;  %v2375_v27 = vld [vmem:[%s1774_s30 + $0x3a0] sm:$0xff] }
  0x5a   : > { %867 = vmax.xlane.f32.xlu1 %v866_v36  ;;  %v527_v36 = vadd.f32 %v526_v18, %v2327_v48  ;;  %v543_v20 = vadd.f32 %v542_v35, %v541_v45  ;;  %v877_v18 = vmax.f32 %v876_v26, %v2994_v33  ;;  %v2997_v48 = vld [vmem:[#allocation17_spill] sm:$0xff]  ;;  %2998 = vst [vmem:[#allocation21_spill] sm:$0xff] %v2360_v54  ;;  %v3001_v26 = vld [vmem:[#allocation18_spill] sm:$0xff] }
  0x5b   : > { %v830_v39 = vsel %vm373_vm0, %v2997_v48, -inf  ;;  %v548_v45 = vadd.f32 %v547_v46, %v2348_v12  ;;  %v856_v35 = vmax.f32 %v855_v10, %v3000_v28  ;;  %v890_v33 = vmax.f32 %v3002_v47, %v3001_v26  ;;  %v2372_v48 = vld [vmem:[%s1774_s30 + $0x398] sm:$0xff]  ;;  %v2384_v26 = vld [vmem:[%s1774_s30 + $0x420] sm:$0xff]  ;;  %v2387_v47 = vld [vmem:[%s1774_s30 + $0x488] sm:$0xff] }
  0x5c   : > { %853 = vmax.xlane.f32.xlu0 %v852_v8  ;;  %v2352_v8 = vld [vmem:[%s1774_s30 + $0x408] sm:$0xff]  ;;  %v898_v46 = vmax.f32 %v897_v49, %v2046_v56  ;;  %v553_v10 = vadd.f32 %v2363_v60, %v2360_v54  ;;  %3005 = vst [vmem:[#allocation9_spill] sm:$0xff] %v2384_v26  ;;  %3006 = vst [vmem:[#allocation15_spill] sm:$0xff] %v2387_v47  ;;  %v532_v49 = vadd.f32 %v2375_v27, %v2372_v48  ;;  %v2402_v54 = vld [vmem:[%s1774_s30 + $0x460] sm:$0xff] }
  0x5d   : > { %2993 = vst [vmem:[#allocation22_spill] sm:$0xff] %v2352_v8  ;;  %v549_v9 = vsel %vm373_vm0, %v2352_v8, 0.0  ;;  %v2390_v8 = vld [vmem:[%s1774_s30 + $0x490] sm:$0xff]  ;;  %v2399_v12 = vld [vmem:[%s1774_s30 + $0x3a8] sm:$0xff]  ;;  %3011 = vst [vmem:[#allocation32_spill] sm:$0xff] %v2402_v54 }
  0x5e   : > { %509 = vadd.xlane.f32.xlu1 %v508_v52  ;;  %v529_v52 = vadd.f32 %v528_v13, %v527_v36  ;;  %v878_v36 = vmax.f32 %v877_v18, %v3003_v11  ;;  %v3004_v13 = vld [vmem:[#allocation29_spill] sm:$0xff]  ;;  %3007 = vst [vmem:[#allocation24_spill] sm:$0xff] %v2390_v8  ;;  %v3009_v18 = vld [vmem:[#allocation19_spill] sm:$0xff]  ;;  %v2405_v60 = vld [vmem:[%s1774_s30 + $0x468] sm:$0xff] }
  0x5f   : > { %v879_v28 = vsel %vm373_vm0, %v3004_v13, -inf  ;;  %v891_v56 = vmax.f32 %v890_v33, %v3009_v18  ;;  %v574_v33 = vadd.f32 %v2390_v8, %v2387_v47  ;;  %v2417_v18 = vld [vmem:[%s1774_s30 + $0x498] sm:$0xff]  ;;  %v2429_v47 = vld [vmem:[%s1774_s30 + $0x3b0] sm:$0xff] }
  0x60   : > { %874 = vmax.xlane.f32.xlu0 %v873_v30  ;;  %v831_v30 = vmax.f32 %v829_v0, %v830_v39  ;;  %v550_v0 = vadd.f32 %v549_v9, %v548_v45  ;;  %v3010_v39 = vld [vmem:[#allocation13_spill] sm:$0xff]  ;;  %v899_v45 = vmax.f32 %v898_v46, %v2064_v19  ;;  %v900_v9 = vsel %vm373_vm0, %v2067_v55, -inf  ;;  %3013 = vst [vmem:[#allocation17_spill] sm:$0xff] %v2417_v18 }
  0x61   : > { %v858_v13 = vsel %vm373_vm0, %v3010_v39, -inf  ;;  %v3014_v39 = vld [vmem:[#allocation20_spill] sm:$0xff]  ;;  %v533_v19 = vadd.f32 %v532_v49, %v2399_v12  ;;  %v567_v46 = vadd.f32 %v2405_v60, %v2402_v54  ;;  %3017 = vst [vmem:[#allocation18_spill] sm:$0xff] %v2429_v47  ;;  %v2432_v8 = vld [vmem:[%s1774_s30 + $0x470] sm:$0xff]  ;;  %v575_v49 = vadd.f32 %v574_v33, %v2417_v18  ;;  %v2444_v54 = vld [vmem:[%s1774_s30 + $0x4a0] sm:$0xff] }
  0x62   : > { %544 = vadd.xlane.f32.xlu1 %v543_v20  ;;  %v3008_v20 = vld [vmem:[#allocation12_spill] sm:$0xff]  ;;  %3018 = vst [vmem:[#allocation16_spill] sm:$0xff] %v2432_v8  ;;  %3022 = vst [vmem:[#allocation29_spill] sm:$0xff] %v2444_v54  ;;  %v3025_v33 = vld [vmem:[#allocation26_spill] sm:$0xff] }
  0x63   : > { %v857_v11 = vmax.f32 %v856_v35, %v3008_v20  ;;  %v554_v35 = vadd.f32 %v553_v10, %v2384_v26  ;;  %v2414_v20 = vld [vmem:[%s1774_s30 + $0x428] sm:$0xff]  ;;  %v3016_v10 = vld [vmem:[#allocation23_spill] sm:$0xff] }
  0x64   : > { %530 = vadd.xlane.f32.xlu0 %v529_v52  ;;  %v880_v52 = vmax.f32 %v878_v36, %v879_v28  ;;  %3012 = vst [vmem:[#allocation30_spill] sm:$0xff] %v2414_v20  ;;  %v892_v36 = vmax.f32 %v891_v56, %v3014_v39  ;;  %v2421_v28 = vld [vmem:[%s1774_s30 + $0x430] sm:$0xff]  ;;  %v893_v55 = vsel %vm373_vm0, %v3016_v10, -inf  ;;  %v2436_v56 = vld [vmem:[%s1774_s30 + $0x3b8] sm:$0xff] }
  0x65   : > { %3015 = vst [vmem:[#allocation11_spill] sm:$0xff] %v2421_v28  ;;  %3019 = vst [vmem:[#allocation25_spill] sm:$0xff] %v2436_v56  ;;  %v3021_v39 = vld [vmem:[#allocation37_spill] sm:$0xff]  ;;  %v556_v10 = vsel %vm373_vm0, %v2421_v28, 0.0 }
  0x66   : > { %832 = vmax.xlane.f32.xlu1 %v831_v30  ;;  %v859_v30 = vmax.f32 %v857_v11, %v858_v13  ;;  %v555_v11 = vadd.f32 %v554_v35, %v2414_v20  ;;  %v3020_v13 = vld [vmem:[#allocation38_spill] sm:$0xff]  ;;  %v2448_v35 = vld [vmem:[%s1774_s30 + $0x4a8] sm:$0xff]  ;;  %v3024_v20 = vld [vmem:[#allocation27_spill] sm:$0xff] }
  0x67   : > { %v904_v26 = vmax.f32 %v3021_v39, %v3020_v13  ;;  %3023 = vst [vmem:[#allocation12_spill] sm:$0xff] %v2448_v35  ;;  %v883_v18 = vmax.f32 %v3025_v33, %v3024_v20  ;;  %v535_v13 = vsel %vm373_vm0, %v2436_v56, 0.0  ;;  %v2456_v39 = vld [vmem:[%s1774_s30 + $0x478] sm:$0xff]  ;;  %v577_v20 = vsel %vm373_vm0, %v2448_v35, 0.0  ;;  %v2468_v33 = vld [vmem:[%s1774_s30 + $0x4b0] sm:$0xff] }
  0x68   : > { %551 = vadd.xlane.f32.xlu0 %v550_v0  ;;  %v901_v0 = vmax.f32 %v899_v45, %v900_v9  ;;  %v534_v45 = vadd.f32 %v533_v19, %v2429_v47  ;;  %v568_v9 = vadd.f32 %v567_v46, %v2432_v8  ;;  %v3026_v19 = vld [vmem:[#allocation39_spill] sm:$0xff]  ;;  %v3027_v46 = vld [vmem:[#allocation40_spill] sm:$0xff]  ;;  %v2471_v56 = vld [vmem:[%s1774_s30 + $0x4b8] sm:$0xff] }
  0x69   : > { %v905_v28 = vmax.f32 %v904_v26, %v3026_v19  ;;  %v925_v8 = vmax.f32 %v3027_v46, %v2103_v7  ;;  %v3030_v47 = vld [vmem:[#allocation34_spill] sm:$0xff]  ;;  %v2483_v46 = vld [vmem:[%s1774_s30 + $0x440] sm:$0xff] }
  0x6a   : > { %881 = vmax.xlane.f32.xlu1 %v880_v52  ;;  %v894_v52 = vmax.f32 %v892_v36, %v893_v55  ;;  %v576_v36 = vadd.f32 %v575_v49, %v2444_v54  ;;  %v2460_v55 = vld [vmem:[%s1774_s30 + $0x480] sm:$0xff]  ;;  %v3028_v49 = vld [vmem:[#allocation28_spill] sm:$0xff]  ;;  %v2480_v19 = vld [vmem:[%s1774_s30 + $0x438] sm:$0xff] }
  0x6b   : > { %v3029_v54 = vld [vmem:[#allocation35_spill] sm:$0xff]  ;;  %v570_v7 = vsel %vm373_vm0, %v2460_v55, 0.0 }
  0x6c   : > { %860 = vmax.xlane.f32.xlu0 %v859_v30  ;;  %v557_v30 = vadd.f32 %v556_v10, %v555_v11  ;;  %v569_v11 = vadd.f32 %v568_v9, %v2456_v39  ;;  %v884_v10 = vmax.f32 %v883_v18, %v3028_v49  ;;  %v918_v26 = vmax.f32 %v3030_v47, %v3029_v54  ;;  %v2492_v47 = vld [vmem:[%s1774_s30 + $0x4c0] sm:$0xff] }
  0x6d   : > { %v578_v35 = vadd.f32 %v577_v20, %v576_v36  ;;  %v581_v18 = vadd.f32 %v2471_v56, %v2468_v33  ;;  %v907_v54 = vsel %vm373_vm0, %v2118_v61, -inf }
  0x6e   : > { %902 = vmax.xlane.f32.xlu1 %v901_v0  ;;  %v536_v0 = vadd.f32 %v535_v13, %v534_v45  ;;  %v926_v45 = vmax.f32 %v925_v8, %v2112_v37  ;;  %v571_v9 = vadd.f32 %v570_v7, %v569_v11  ;;  %v3031_v13 = vld [vmem:[#allocation31_spill] sm:$0xff]  ;;  %v3033_v37 = vld [vmem:[#allocation33_spill] sm:$0xff]  ;;  %v932_v11 = vmax.f32 %v2165_v43, %v2168_v59 }
  0x6f   : > { %v885_v49 = vmax.f32 %v884_v10, %v3031_v13  ;;  %v886_v8 = vsel %vm373_vm0, %v3033_v37, -inf  ;;  %v928_v10 = vsel %vm373_vm0, %v2142_v62, -inf  ;;  %v921_v43 = vsel %vm373_vm0, %v2100_v6, -inf  ;;  %v2522_v59 = vld [vmem:[%s1774_s30 + $0x450] sm:$0xff] }
  0x70   : > { %895 = vmax.xlane.f32.xlu0 %v894_v52  ;;  %v906_v52 = vmax.f32 %v905_v28, %v2108_v15  ;;  %v560_v15 = vadd.f32 %v2483_v46, %v2480_v19  ;;  %v2501_v28 = vld [vmem:[%s1774_s30 + $0x448] sm:$0xff]  ;;  %v927_v20 = vmax.f32 %v926_v45, %v2138_v1  ;;  %v911_v1 = vmax.f32 %v2126_v25, %v2129_v40  ;;  %v2526_v45 = vld [vmem:[%s1774_s30 + $0x458] sm:$0xff] }
  0x71   : > { %v887_v7 = vmax.f32 %v885_v49, %v886_v8  ;;  %v563_v49 = vsel %vm373_vm0, %v2526_v45, 0.0 }
  0x72   : > { %558 = vadd.xlane.f32.xlu1 %v557_v30  ;;  %v3032_v30 = vld [vmem:[#allocation36_spill] sm:$0xff]  ;;  %v908_v61 = vmax.f32 %v906_v52, %v907_v54  ;;  %v929_v62 = vmax.f32 %v927_v20, %v928_v10  ;;  %v912_v54 = vmax.f32 %v911_v1, %v2150_v23  ;;  %v939_v23 = vmax.f32 %v2234_v32, %v2237_v4 }
  0x73   : > { %v919_v36 = vmax.f32 %v918_v26, %v3032_v30  ;;  %v2510_v26 = vld [vmem:[%s1774_s30 + $0x4c8] sm:$0xff]  ;;  %v2514_v30 = vld [vmem:[%s1774_s30 + $0x4d0] sm:$0xff] }
  0x74   : > { %537 = vadd.xlane.f32.xlu0 %v536_v0  ;;  %v582_v0 = vadd.f32 %v581_v18, %v2492_v47  ;;  %v953_v18 = vmax.f32 %v2195_v63, %v2198_v22  ;;  %v584_v25 = vsel %vm373_vm0, %v2514_v30, 0.0  ;;  %v913_v37 = vmax.f32 %v912_v54, %v2177_v14 }
  0x75   : > { %v920_v13 = vmax.f32 %v919_v36, %v2090_v21  ;;  %v933_v21 = vmax.f32 %v932_v11, %v2192_v31  ;;  %v2540_v31 = vld [vmem:[%s1774_s30 + $0x4d8] sm:$0xff]  ;;  %v2543_v36 = vld [vmem:[%s1774_s30 + $0x4e0] sm:$0xff]  ;;  %v940_v4 = vmax.f32 %v939_v23, %v2258_v34  ;;  %v974_v14 = vmax.f32 %v2261_v24, %v2264_v41 }
  0x76   : > { %579 = vadd.xlane.f32.xlu1 %v578_v35  ;;  %v561_v35 = vadd.f32 %v560_v15, %v2501_v28  ;;  %v583_v52 = vadd.f32 %v582_v0, %v2510_v26  ;;  %v954_v15 = vmax.f32 %v953_v18, %v2222_v50  ;;  %v2558_v50 = vld [vmem:[%s1774_s30 + $0x4e8] sm:$0xff]  ;;  %v3034_v11 = vld [vmem:[#allocation42_spill] sm:$0xff] }
  0x77   : > { %v922_v40 = vmax.f32 %v920_v13, %v921_v43  ;;  %v934_v22 = vmax.f32 %v933_v21, %v2219_v42  ;;  %v914_v42 = vsel %vm373_vm0, %v2184_v57, -inf  ;;  %v960_v10 = vmax.f32 %v3034_v11, %v2276_v3  ;;  %v2573_v13 = vld [vmem:[%s1774_s30 + $0x4f0] sm:$0xff]  ;;  %v368_v41 = vld [vmem:[%s1774_s30 + $0x4f8] sm:$0xff]  ;;  %v3036_v43 = vld [vmem:[#allocation43_spill] sm:$0xff] }
  0x78   : > { %572 = vadd.xlane.f32.xlu0 %v571_v9  ;;  %v562_v6 = vadd.f32 %v561_v35, %v2522_v59  ;;  %v946_v9 = vmax.f32 %v2153_v29, %v2156_v51  ;;  %v585_v63 = vadd.f32 %v584_v25, %v583_v52  ;;  %v935_v29 = vsel %vm373_vm0, %v2226_v17, -inf  ;;  %v3037_v52 = vld [vmem:[#allocation45_spill] sm:$0xff]  ;;  %v3038_v21 = vld [vmem:[#allocation44_spill] sm:$0xff]  ;;  %v3044_v23 = vld [vmem:[#allocation10_spill] sm:$0xff] }
  0x79   : > { %v936_v32 = vmax.f32 %v934_v22, %v935_v29  ;;  %v955_v17 = vmax.f32 %v954_v15, %v2246_v5  ;;  %v915_v20 = vmax.f32 %v913_v37, %v914_v42  ;;  %v941_v24 = vmax.f32 %v940_v4, %v2285_v53  ;;  %v3043_v22 = vld [vmem:[#allocation47_spill] sm:$0xff]  ;;  %v3045_v29 = vld [vmem:[#allocation21_spill] sm:$0xff]  ;;  %v3046_v37 = vld [vmem:[#allocation48_spill] sm:$0xff] }
  0x7a   : > { %909 = vmax.xlane.f32.xlu1 %v908_v61  ;;  %v564_v51 = vadd.f32 %v563_v49, %v562_v6  ;;  %v947_v8 = vmax.f32 %v946_v9, %v2180_v58  ;;  %v588_v61 = vadd.f32 %v2543_v36, %v2540_v31  ;;  %v956_v58 = vsel %vm373_vm0, %v2250_v38, -inf  ;;  %v3041_v6 = vld [vmem:[#allocation7_spill] sm:$0xff]  ;;  %v3042_v49 = vld [vmem:[#allocation8_spill] sm:$0xff]  ;;  %v3049_v4 = vld [vmem:[#allocation25_spill] sm:$0xff] }
  0x7b   : > { %v957_v34 = vmax.f32 %v955_v17, %v956_v58  ;;  %v975_v38 = vmax.f32 %v974_v14, %v2288_v16  ;;  %v942_v35 = vsel %vm373_vm0, %v2292_v44, -inf  ;;  %v981_v18 = vmax.f32 %v3038_v21, %v3037_v52  ;;  %v3039_v16 = vld [vmem:[#allocation46_spill] sm:$0xff] }
  0x7c   : > { %888 = vmax.xlane.f32.xlu0 %v887_v7  ;;  %v948_v0 = vmax.f32 %v947_v8, %v2207_v2  ;;  %v589_v57 = vadd.f32 %v588_v61, %v2558_v50  ;;  %v3035_v7 = vld [vmem:[#allocation41_spill] sm:$0xff]  ;;  %v967_v2 = vmax.f32 %v2372_v48, %v2375_v27  ;;  %v591_v53 = vsel %vm373_vm0, %v368_v41, 0.0  ;;  %v3040_v27 = vld [vmem:[#allocation32_spill] sm:$0xff]  ;;  %v3047_v61 = vld [vmem:[#allocation18_spill] sm:$0xff] }
  0x7d   : > { %v949_v5 = vsel %vm373_vm0, %v3035_v7, -inf  ;;  %v943_v25 = vmax.f32 %v941_v24, %v942_v35  ;;  %v1002_v44 = vmax.f32 %v3040_v27, %v2405_v60  ;;  %v977_v54 = vsel %vm373_vm0, %v3041_v6, -inf  ;;  %v3048_v60 = vld [vmem:[#allocation16_spill] sm:$0xff]  ;;  %v3053_v7 = vld [vmem:[#allocation15_spill] sm:$0xff] }
  0x7e   : > { %930 = vmax.xlane.f32.xlu1 %v929_v62  ;;  %v950_v3 = vmax.f32 %v948_v0, %v949_v5  ;;  %v590_v1 = vadd.f32 %v589_v57, %v2573_v13  ;;  %v961_v62 = vmax.f32 %v960_v10, %v3036_v43  ;;  %v968_v48 = vmax.f32 %v967_v2, %v2399_v12  ;;  %v3051_v57 = vld [vmem:[#allocation9_spill] sm:$0xff]  ;;  %v3052_v10 = vld [vmem:[#allocation24_spill] sm:$0xff] }
  0x7f   : > { %v982_v15 = vmax.f32 %v981_v18, %v3043_v22  ;;  %v963_v8 = vsel %vm373_vm0, %v3046_v37, -inf  ;;  %v995_v17 = vmax.f32 %v2480_v19, %v2483_v46  ;;  %v970_v14 = vsel %vm373_vm0, %v3049_v4, -inf  ;;  %v3057_v18 = vld [vmem:[#allocation11_spill] sm:$0xff] }
  0x80   : > { %923 = vmax.xlane.f32.xlu0 %v922_v40  ;;  %v976_v40 = vmax.f32 %v975_v38, %v3039_v16  ;;  %v592_v9 = vadd.f32 %v591_v53, %v590_v1  ;;  %v969_v42 = vmax.f32 %v968_v48, %v3047_v61  ;;  %v1009_v5 = vmax.f32 %v3053_v7, %v3052_v10  ;;  %v3055_v1 = vld [vmem:[#allocation30_spill] sm:$0xff]  ;;  %v3059_v48 = vld [vmem:[#allocation12_spill] sm:$0xff] }
  0x81   : > { %v996_v19 = vmax.f32 %v995_v17, %v2501_v28  ;;  %v1023_v46 = vmax.f32 %v2540_v31, %v2543_v36  ;;  %v1005_v35 = vsel %vm373_vm0, %v2460_v55, -inf  ;;  %v1016_v21 = vmax.f32 %v2468_v33, %v2471_v56  ;;  %v1233_v17 = vld [vmem:[%s2875_s1 + $0x18] sm:$0xff] }
  0x82   : > { %586 = vadd.xlane.f32.xlu1 %v585_v63  ;;  %v962_v63 = vmax.f32 %v961_v62, %v3042_v49  ;;  %v978_v12 = vmax.f32 %v976_v40, %v977_v54  ;;  %v971_v38 = vmax.f32 %v969_v42, %v970_v14  ;;  %v3056_v62 = vld [vmem:[#allocation17_spill] sm:$0xff]  ;;  %v998_v55 = vsel %vm373_vm0, %v2526_v45, -inf }
  0x83   : > { %v1010_v52 = vmax.f32 %v1009_v5, %v3056_v62  ;;  %v997_v53 = vmax.f32 %v996_v19, %v2522_v59  ;;  %v1024_v31 = vmax.f32 %v1023_v46, %v2558_v50  ;;  %v1017_v40 = vmax.f32 %v1016_v21, %v2492_v47 }
  0x84   : > { %565 = vadd.xlane.f32.xlu0 %v564_v51  ;;  %v988_v51 = vmax.f32 %v3045_v29, %v3044_v23  ;;  %v964_v58 = vmax.f32 %v962_v63, %v963_v8  ;;  %v1012_v56 = vsel %vm373_vm0, %v3059_v48, -inf  ;;  %v1692_v59 = vmov 0.0   ;;  %v1230_v29 = vld [vmem:[%s2875_s1] sm:$0xff] }
  0x85   : > { %v999_v33 = vmax.f32 %v997_v53, %v998_v55  ;;  %v1025_v27 = vmax.f32 %v1024_v31, %v2573_v13  ;;  %207 = vst.msk [vmem:[#allocation2] sm:$0xff] %vm206_vm1, %v1692_v59  ;;  %v1026_v50 = vsel %vm373_vm0, %v368_v41, -inf  ;;  %v1019_v47 = vsel %vm373_vm0, %v2514_v30, -inf }
  0x86   : > { %937 = vmax.xlane.f32.xlu1 %v936_v32  ;;  %v1003_v32 = vmax.f32 %v1002_v44, %v3048_v60  ;;  %v989_v11 = vmax.f32 %v988_v51, %v3051_v57  ;;  %v1018_v44 = vmax.f32 %v1017_v40, %v2510_v26  ;;  %v1693_v49 = vmov -inf   ;;  %v1231_v51 = vld [vmem:[%s2875_s1 + $0x8] sm:$0xff] }
  0x87   : > { %v1027_v6 = vmax.f32 %v1025_v27, %v1026_v50  ;;  %208 = vst.msk [vmem:[#allocation3] sm:$0xff] %vm206_vm1, %v1693_v49  ;;  %v1542_v8 = vpack.c.bf16 %v1231_v51, %v1230_v29 }
  0x88   : > { %916 = vmax.xlane.f32.xlu0 %v915_v20  ;;  %v3050_v20 = vld [vmem:[#allocation14_spill] sm:$0xff]  ;;  %v1004_v2 = vmax.f32 %v1003_v32, %v2456_v39  ;;  %v990_v43 = vmax.f32 %v989_v11, %v3055_v1  ;;  %v991_v39 = vsel %vm373_vm0, %v3057_v18, -inf  ;;  %v1020_v54 = vmax.f32 %v1018_v44, %v1019_v47  ;;  %v1232_v32 = vld [vmem:[%s2875_s1 + $0x10] sm:$0xff] }
  0x89   : > { %v983_v0 = vmax.f32 %v982_v15, %v3050_v20  ;;  %1543 = vmatprep.subr.bf16.mxu0 %v1542_v8  ;;  %v1546_v20 = vpack.c.bf16 %v1233_v17, %v1232_v32 }
  0x8a   : > { %958 = vmax.xlane.f32.xlu1 %v957_v34  ;;  %v3054_v34 = vld [vmem:[#allocation22_spill] sm:$0xff]  ;;  %v1006_v28 = vmax.f32 %v1004_v2, %v1005_v35  ;;  %v992_v36 = vmax.f32 %v990_v43, %v991_v39  ;;  %1545 = vmatpush3.bf16.msra.mxu0 %v1542_v8 }
  0x8b   : > { %v984_v24 = vsel %vm373_vm0, %v3054_v34, -inf  ;;  %1547 = vmatprep.subr.bf16.mxu0 %v1546_v20 }
  0x8c   : > { %951 = vmax.xlane.f32.xlu0 %v950_v3  ;;  %v985_v3 = vmax.f32 %v983_v0, %v984_v24 }
  0x8e   : > { %944 = vmax.xlane.f32.xlu1 %v943_v25  ;;  %v3058_v25 = vld [vmem:[#allocation29_spill] sm:$0xff]  ;;  %1549 = vmatpush3.bf16.msra.mxu0 %v1546_v20 }
  0x8f   : > { %v1011_v16 = vmax.f32 %v1010_v52, %v3058_v25 }
  0x90   : > { %593 = vadd.xlane.f32.xlu0 %v592_v9  ;;  %v627_v9 = vlaneseq }
  0x91   : > { %v1013_v45 = vmax.f32 %v1011_v16, %v1012_v56 }
  0x92   : > { %979 = vmax.xlane.f32.xlu1 %v978_v12  ;;  %v628_v13 = vand.u32 127, %v627_v9  ;;  %v630_v63 = vshrl.u32 %v627_v9, 7 }
  0x94   : > { %965 = vmax.xlane.f32.xlu0 %v964_v58  ;;  %v633_v41 = vadd.s32 4294967288, %v628_v13  ;;  %v2638_v15 = vsub.s32 %v628_v13, %v630_v63  ;;  %v640_v23 = vadd.s32 4294967280, %v628_v13  ;;  %v647_v10 = vadd.s32 4294967272, %v628_v13 }
  0x96   : > { %972 = vmax.xlane.f32.xlu1 %v971_v38  ;;  %v2640_v26 = vsub.s32 %v633_v41, %v630_v63  ;;  %v2650_v42 = vsub.s32 %v640_v23, %v630_v63  ;;  %v2667_v19 = vsub.s32 %v647_v10, %v630_v63 }
  0x98   : > { %986 = vmax.xlane.f32.xlu0 %v985_v3 }
  0x9a   : > { %1007 = vmax.xlane.f32.xlu1 %v1006_v28 }
  0x9c   : > { %993 = vmax.xlane.f32.xlu0 %v992_v36 }
  0x9e   : > { %1000 = vmax.xlane.f32.xlu1 %v999_v33 }
  0xa0   : > { %1014 = vmax.xlane.f32.xlu0 %v1013_v45 }
  0xa2   : > { %1028 = vmax.xlane.f32.xlu1 %v1027_v6 }
  0xa4   : > { %1021 = vmax.xlane.f32.xlu0 %v1020_v54 }
  0xb3   : > { %v405_v22 = vpop.xlane.xlu1 %404 }
  0xb4   : > { %v657_v12 = vrot.slane %v405_v22, %v2638_v15 }
  0xb5   : > { %v377_v30 = vpop.xlane.xlu0 %376 }
  0xb6   : > { %v632_v4 = vrot.slane %v377_v30, %v2638_v15 }
  0xb7   : > { %v412_v37 = vpop.xlane.xlu1 %411 }
  0xb8   : > { %v661_v61 = vrot.slane %v412_v37, %v2640_v26 }
  0xb9   : > { %v384_v60 = vpop.xlane.xlu0 %383 }
  0xba   : > { %v662_v14 = vsel %vm638_vm2, %v661_v61, %v657_v12  ;;  %v637_v58 = vrot.slane %v384_v60, %v2640_v26 }
  0xbb   : > { %v419_v0 = vpop.xlane.xlu1 %418 }
  0xbc   : > { %v639_v57 = vsel %vm638_vm2, %v637_v58, %v632_v4  ;;  %v666_v11 = vrot.slane %v419_v0, %v2650_v42 }
  0xbd   : > { %v391_v7 = vpop.xlane.xlu0 %390 }
  0xbe   : > { %v667_v5 = vsel %vm645_vm3, %v666_v11, %v662_v14  ;;  %v644_v34 = vrot.slane %v391_v7, %v2650_v42 }
  0xbf   : > { %v440_v24 = vpop.xlane.xlu1 %439 }
  0xc0   : > { %v646_v38 = vsel %vm645_vm3, %v644_v34, %v639_v57  ;;  %v680_v2 = vrot.slane %v440_v24, %v2640_v26 }
  0xc1   : > { %v433_v46 = vpop.xlane.xlu0 %432 }
  0xc2   : > { %v676_v35 = vrot.slane %v433_v46, %v2638_v15 }
  0xc3   : > { %v426_v3 = vpop.xlane.xlu1 %425 }
  0xc4   : > { %v681_v1 = vsel %vm638_vm2, %v680_v2, %v676_v35  ;;  %v671_v43 = vrot.slane %v426_v3, %v2667_v19 }
  0xc5   : > { %v398_v62 = vpop.xlane.xlu0 %397 }
  0xc6   : > { %v672_v52 = vsel %vm652_vm4, %v671_v43, %v667_v5  ;;  %v651_v21 = vrot.slane %v398_v62, %v2667_v19 }
  0xc7   : > { %v461_v18 = vpop.xlane.xlu1 %460 }
  0xc8   : > { %v653_v39 = vsel %vm652_vm4, %v651_v21, %v646_v38  ;;  %v695_v40 = vrot.slane %v461_v18, %v2638_v15 }
  0xc9   : > { %v788_v28 = vsel %vm787_vm5, %v672_v52, %v653_v39  ;;  %v447_v53 = vpop.xlane.xlu0 %446 }
  0xca   : > { %v685_v31 = vrot.slane %v447_v53, %v2650_v42 }
  0xcb   : > { %v454_v55 = vpop.xlane.xlu1 %453 }
  0xcc   : > { %v686_v36 = vsel %vm645_vm3, %v685_v31, %v681_v1  ;;  %v690_v25 = vrot.slane %v454_v55, %v2667_v19 }
  0xcd   : > { %v468_v16 = vpop.xlane.xlu0 %467 }
  0xce   : > { %v691_v48 = vsel %vm652_vm4, %v690_v25, %v686_v36  ;;  %v699_v56 = vrot.slane %v468_v16, %v2640_v26 }
  0xcf   : > { %v790_v33 = vsel %vm789_vm6, %v691_v48, %v788_v28  ;;  %v489_v27 = vpop.xlane.xlu1 %488 }
  0xd0   : > { %v700_v59 = vsel %vm638_vm2, %v699_v56, %v695_v40  ;;  %v714_v54 = vrot.slane %v489_v27, %v2638_v15 }
  0xd1   : > { %v475_v50 = vpop.xlane.xlu0 %474 }
  0xd2   : > { %v704_v45 = vrot.slane %v475_v50, %v2650_v42 }
  0xd3   : > { %v812_v44 = vpop.xlane.xlu1 %811 }
  0xd4   : > { %v705_v47 = vsel %vm645_vm3, %v704_v45, %v700_v59  ;;  %v1065_v41 = vrot.slane %v812_v44, %v2638_v15 }
  0xd5   : > { %v496_v6 = vpop.xlane.xlu0 %495 }
  0xd6   : > { %v718_v9 = vrot.slane %v496_v6, %v2640_v26 }
  0xd7   : > { %v840_v13 = vpop.xlane.xlu1 %839 }
  0xd8   : > { %v719_v49 = vsel %vm638_vm2, %v718_v9, %v714_v54  ;;  %v1084_v37 = vrot.slane %v840_v13, %v2638_v15 }
  0xd9   : > { %v819_v63 = vpop.xlane.xlu0 %818 }
  0xda   : > { %v1069_v22 = vrot.slane %v819_v63, %v2640_v26 }
  0xdb   : > { %v482_v23 = vpop.xlane.xlu1 %481 }
  0xdc   : > { %v1070_v30 = vsel %vm638_vm2, %v1069_v22, %v1065_v41  ;;  %v709_v29 = vrot.slane %v482_v23, %v2667_v19 }
  0xdd   : > { %v847_v51 = vpop.xlane.xlu0 %846 }
  0xde   : > { %v710_v8 = vsel %vm652_vm4, %v709_v29, %v705_v47  ;;  %v1088_v12 = vrot.slane %v847_v51, %v2640_v26 }
  0xdf   : > { %v792_v61 = vsel %vm791_vm7, %v710_v8, %v790_v33  ;;  %v2697_v60 = vpop.xlane.xlu1 %516 }
  0xe0   : > { %v1089_v32 = vsel %vm638_vm2, %v1088_v12, %v1084_v37  ;;  %v733_v51 = vrot.slane %v2697_v60, %v2638_v15 }
  0xe1   : > { %v503_v17 = vpop.xlane.xlu0 %502 }
  0xe2   : > { %v723_v57 = vrot.slane %v503_v17, %v2650_v42 }
  0xe3   : > { %v826_v4 = vpop.xlane.xlu1 %825 }
  0xe4   : > { %v1074_v14 = vrot.slane %v826_v4, %v2650_v42  ;;  %v724_v24 = vsel %vm645_vm3, %v723_v57, %v719_v49 }
  0xe5   : > { %v524_v58 = vpop.xlane.xlu0 %523 }
  0xe6   : > { %v1075_v20 = vsel %vm645_vm3, %v1074_v14, %v1070_v30  ;;  %v737_v22 = vrot.slane %v524_v58, %v2640_v26 }
  0xe7   : > { %v868_v0 = vpop.xlane.xlu1 %867 }
  0xe8   : > { %v1103_v27 = vrot.slane %v868_v0, %v2638_v15  ;;  %v738_v17 = vsel %vm638_vm2, %v737_v22, %v733_v51 }
  0xe9   : > { %v854_v11 = vpop.xlane.xlu0 %853 }
  0xea   : > { %v1093_v10 = vrot.slane %v854_v11, %v2650_v42 }
  0xeb   : > { %v510_v7 = vpop.xlane.xlu1 %509 }
  0xec   : > { %v1094_v5 = vsel %vm645_vm3, %v1093_v10, %v1089_v32  ;;  %v728_v34 = vrot.slane %v510_v7, %v2667_v19 }
  0xed   : > { %v875_v38 = vpop.xlane.xlu0 %874 }
  0xee   : > { %v729_v2 = vsel %vm652_vm4, %v728_v34, %v724_v24  ;;  %v1107_v48 = vrot.slane %v875_v38, %v2640_v26 }
  0xef   : > { %v794_v46 = vsel %vm793_vm8, %v729_v2, %v792_v61  ;;  %v545_v35 = vpop.xlane.xlu1 %544  ;;  %v369_v2 = vld [vmem:[#allocation2] sm:$0xff] }
  0xf0   : > { %v1108_v50 = vsel %vm638_vm2, %v1107_v48, %v1103_v27  ;;  %v752_v12 = vrot.slane %v545_v35, %v2638_v15 }
  0xf1   : > { %v531_v3 = vpop.xlane.xlu0 %530 }
  0xf2   : > { %v742_v23 = vrot.slane %v531_v3, %v2650_v42 }
  0xf3   : > { %v833_v1 = vpop.xlane.xlu1 %832 }
  0xf4   : > { %v1079_v52 = vrot.slane %v833_v1, %v2667_v19  ;;  %v743_v58 = vsel %vm645_vm3, %v742_v23, %v738_v17 }
  0xf5   : > { %v552_v43 = vpop.xlane.xlu0 %551 }
  0xf6   : > { %v1080_v28 = vsel %vm652_vm4, %v1079_v52, %v1075_v20  ;;  %v756_v30 = vrot.slane %v552_v43, %v2640_v26 }
  0xf7   : > { %v882_v62 = vpop.xlane.xlu1 %881 }
  0xf8   : > { %v1112_v56 = vrot.slane %v882_v62, %v2650_v42  ;;  %v757_v20 = vsel %vm638_vm2, %v756_v30, %v752_v12 }
  0xf9   : > { %v861_v21 = vpop.xlane.xlu0 %860 }
  0xfa   : > { %v1098_v18 = vrot.slane %v861_v21, %v2667_v19  ;;  %v1113_v44 = vsel %vm645_vm3, %v1112_v56, %v1108_v50 }
  0xfb   : > { %v2711_v39 = vpop.xlane.xlu1 %902 }
  0xfc   : > { %v1099_v53 = vsel %vm652_vm4, %v1098_v18, %v1094_v5 }
  0xfd   : > { %v1214_v31 = vsel %vm787_vm5, %v1099_v53, %v1080_v28  ;;  %v2716_v55 = vpop.xlane.xlu0 %895 }
  0xfe   : > { %v1122_v53 = vrot.slane %v2716_v55, %v2638_v15 }
  0xff   : > { %v559_v36 = vpop.xlane.xlu1 %558 }
 0x100   : > { %v761_v37 = vrot.slane %v559_v36, %v2650_v42 }
 0x101   : > { %v538_v25 = vpop.xlane.xlu0 %537 }
 0x102   : > { %v747_v8 = vrot.slane %v538_v25, %v2667_v19  ;;  %v762_v57 = vsel %vm645_vm3, %v761_v37, %v757_v20 }
 0x103   : > { %v580_v16 = vpop.xlane.xlu1 %579 }
 0x104   : > { %v775_v4 = vrot.slane %v580_v16, %v2640_v26  ;;  %v748_v11 = vsel %vm652_vm4, %v747_v8, %v743_v58 }
 0x105   : > { %v573_v40 = vpop.xlane.xlu0 %572  ;;  %v796_v24 = vsel %vm795_vm9, %v748_v11, %v794_v46  ;;  %v1126_v46 = vrot.slane %v2711_v39, %v2640_v26  ;;  %v805_v11 = vld [vmem:[#allocation3] sm:$0xff] }
 0x106   : > { %v771_v14 = vrot.slane %v573_v40, %v2638_v15 }
 0x107   : > { %v2720_v33 = vpop.xlane.xlu1 %909 }
 0x108   : > { %v776_v5 = vsel %vm638_vm2, %v775_v4, %v771_v14  ;;  %v1131_v36 = vrot.slane %v2720_v33, %v2650_v42 }
 0x109   : > { %v889_v59 = vpop.xlane.xlu0 %888 }
 0x10a   : > { %v1117_v45 = vrot.slane %v889_v59, %v2667_v19 }
 0x10b   : > { %v2726_v47 = vpop.xlane.xlu1 %930 }
 0x10c   : > { %v1118_v6 = vsel %vm652_vm4, %v1117_v45, %v1113_v44  ;;  %v1145_v25 = vrot.slane %v2726_v47, %v2640_v26  ;;  %v1127_v44 = vsel %vm638_vm2, %v1126_v46, %v1122_v53 }
 0x10d   : > { %v2730_v54 = vsel %vm789_vm6, %v1118_v6, %v1214_v31  ;;  %v2732_v9 = vpop.xlane.xlu0 %923 }
 0x10e   : > { %v1141_v16 = vrot.slane %v2732_v9, %v2638_v15 }
 0x10f   : > { %v587_v13 = vpop.xlane.xlu1 %586 }
 0x110   : > { %v780_v60 = vrot.slane %v587_v13, %v2650_v42  ;;  %v1132_v13 = vsel %vm645_vm3, %v1131_v36, %v1127_v44 }
 0x111   : > { %v566_v49 = vpop.xlane.xlu0 %565 }
 0x112   : > { %v766_v61 = vrot.slane %v566_v49, %v2667_v19  ;;  %v781_v38 = vsel %vm645_vm3, %v780_v60, %v776_v5  ;;  %v1146_v49 = vsel %vm638_vm2, %v1145_v25, %v1141_v16 }
 0x113   : > { %v2734_v63 = vpop.xlane.xlu1 %937 }
 0x114   : > { %v767_v10 = vsel %vm652_vm4, %v766_v61, %v762_v57  ;;  %v1150_v40 = vrot.slane %v2734_v63, %v2650_v42 }
 0x115   : > { %v2736_v41 = vpop.xlane.xlu0 %916  ;;  %v798_v3 = vsel %vm797_vm10, %v767_v10, %v796_v24 }
 0x116   : > { %v1136_v48 = vrot.slane %v2736_v41, %v2667_v19  ;;  %v1151_v22 = vsel %vm645_vm3, %v1150_v40, %v1146_v49 }
 0x117   : > { %v2741_v29 = vpop.xlane.xlu1 %958 }
 0x118   : > { %v1164_v39 = vrot.slane %v2741_v29, %v2640_v26  ;;  %v1137_v23 = vsel %vm652_vm4, %v1136_v48, %v1132_v13 }
 0x119   : > { %v952_v32 = vpop.xlane.xlu0 %951  ;;  %v1216_v58 = vsel %vm791_vm7, %v1137_v23, %v2730_v54 }
 0x11a   : > { %v1160_v55 = vrot.slane %v952_v32, %v2638_v15 }
 0x11b   : > { %v945_v0 = vpop.xlane.xlu1 %944 }
 0x11c   : > { %v1155_v33 = vrot.slane %v945_v0, %v2667_v19  ;;  %v1165_v30 = vsel %vm638_vm2, %v1164_v39, %v1160_v55 }
 0x11d   : > { %v594_v7 = vpop.xlane.xlu0 %593 }
 0x11e   : > { %v785_v34 = vrot.slane %v594_v7, %v2667_v19  ;;  %v1156_v37 = vsel %vm652_vm4, %v1155_v33, %v1151_v22 }
 0x11f   : > { %v980_v35 = vpop.xlane.xlu1 %979  ;;  %v1217_v60 = vsel %vm793_vm8, %v1156_v37, %v1216_v58 }
 0x120   : > { %v786_v1 = vsel %vm652_vm4, %v785_v34, %v781_v38  ;;  %v1179_v63 = vrot.slane %v980_v35, %v2638_v15 }
 0x121   : > { %v800_v43 = vsel %vm799_vm11, %v786_v1, %v798_v3  ;;  %v966_v62 = vpop.xlane.xlu0 %965 }
 0x122   : > { %v802_v52 = vadd.f32 %v800_v43, %v369_v2  ;;  %v1169_v59 = vrot.slane %v966_v62, %v2650_v42 }
 0x123   : > { %v973_v21 = vpop.xlane.xlu1 %972 }
 0x124   : > { %804 = vst.msk [vmem:[#allocation2] sm:$0xff] %vm206_vm1, %v802_v52  ;;  %v1174_v47 = vrot.slane %v973_v21, %v2667_v19  ;;  %v1170_v8 = vsel %vm645_vm3, %v1169_v59, %v1165_v30 }
 0x125   : > { %v987_v18 = vpop.xlane.xlu0 %986 }
 0x126   : > { %v1183_v50 = vrot.slane %v987_v18, %v2640_v26  ;;  %v1175_v61 = vsel %vm652_vm4, %v1174_v47, %v1170_v8 }
 0x127   : > { %v1008_v28 = vpop.xlane.xlu1 %1007  ;;  %v1218_v57 = vsel %vm795_vm9, %v1175_v61, %v1217_v60 }
 0x128   : > { %v1184_v12 = vsel %vm638_vm2, %v1183_v50, %v1179_v63  ;;  %v1198_v32 = vrot.slane %v1008_v28, %v2638_v15 }
 0x129   : > { %v994_v31 = vpop.xlane.xlu0 %993 }
 0x12a   : > { %v1188_v6 = vrot.slane %v994_v31, %v2650_v42 }
 0x12b   : > { %v1001_v56 = vpop.xlane.xlu1 %1000  ;;  %v1227_v27 = vld [vmem:[#allocation2] sm:$0xff] }
 0x12c   : > { %v1228_v45 = vmul.f32 0.0017361111, %v1227_v27  ;;  %v1193_v41 = vrot.slane %v1001_v56, %v2667_v19  ;;  %v1189_v17 = vsel %vm645_vm3, %v1188_v6, %v1184_v12 }
 0x12d   : > { %v1015_v9 = vpop.xlane.xlu0 %1014 }
 0x12e   : > { %1534 = vmatprep.mubr.msk.f32.mxu0 %vm206_vm1, %v1228_v45  ;;  %v1202_v29 = vrot.slane %v1015_v9, %v2640_v26  ;;  %v1194_v26 = vsel %vm652_vm4, %v1193_v41, %v1189_v17 }
 0x12f   : > { %v1029_v51 = vpop.xlane.xlu1 %1028  ;;  %v1219_v10 = vsel %vm797_vm10, %v1194_v26, %v1218_v57 }
 0x130   : > { %v1212_v14 = vrot.slane %v1029_v51, %v2667_v19  ;;  %v1203_v0 = vsel %vm638_vm2, %v1202_v29, %v1198_v32 }
 0x131   : > { %v1022_v4 = vpop.xlane.xlu0 %1021 }
 0x132   : > { %v1207_v20 = vrot.slane %v1022_v4, %v2650_v42  ;;  %v1317_v42 = vld [vmem:[%s2876_s2] sm:$0x3] }
 0x133   : > { %1537 = vmatprep.subr.msk.mxu1 %vm1325_vm12, %v1317_v42 }
 0x134   : > { %v1208_v15 = vsel %vm645_vm3, %v1207_v20, %v1203_v0  ;;  %1538 = vmatpush3.msk.msra.mxu1 %vm1325_vm12, %v1317_v42 }
 0x135   : > { %v1213_v19 = vsel %vm652_vm4, %v1212_v14, %v1208_v15 }
 0x136   : > { %v1220_v7 = vsel %vm799_vm11, %v1213_v19, %v1219_v10 }
 0x137   : > { %v1222_v54 = vmax.f32 %v805_v11, %v1220_v7 }
 0x139   : > { %1223 = vst.msk [vmem:[#allocation3] sm:$0xff] %vm206_vm1, %v1222_v54 }
 0x140   : > { %v1229_v5 = vld [vmem:[#allocation3] sm:$0xff] }
 0x141   : > { %1535 = vmatmul.mubr.msk.f32.vlgmr.msra.gmra.mrb[0].mxu0 %vm206_vm1, %v1229_v5 }
 0x214   : > { %v1536_v34 = vpop.f32.mrb[0].mxu0 }
 0x215   : > { %v1306_v24 = vpop.f32.mrb[1].mxu0  ;;  %v1316_v2 = vmax.f32 %v1536_v34, 0.0 }
 0x216   : > { %v1315_v38 = vmax.f32 %v1306_v24, 0.0 }
 0x218   : > { %1539 = vmatprep.mubr.msk.f32.mxu1 %vm1318_vm13, %v1315_v38 }
 0x219   : > { %1540 = vmatmul.mubr.msk.f32.vlgmr.msra.gmra.mrb[0].mxu1 %vm1318_vm13, %v1316_v2 }
 0x2ec   : > { %v1541_v35 = vpop.f32.mrb[0].mxu1 }
 0x2ed   : > { %v1395_v3 = vpop.f32.mrb[1].mxu1 }
 0x2ee   : > { %v1404_v1 = vadd.f32 %v1541_v35, %v1395_v3 }
 0x2f0   : > { %v1512_v43 = vmul.f32 -1.442695, %v1404_v1 }
 0x2f2   : > { %1608 = vpow2.f32 %v1512_v43 }
 0x2fc   : > { %v1609_v62 = vpop.eup %1608 }
 0x2fd   : > { %v1408_v52 = vadd.f32 1.0, %v1609_v62 }
 0x2ff   : > { %1610 = vrcp.f32 %v1408_v52 }
 0x309   : > { %v1611_v21 = vpop.eup %1610 }
 0x30a   : > { %1411 = vst.msk [vmem:[%s189_s27] sm:$0xff] %vm206_vm1, %v1611_v21 }
 0x30b   : > { %1625 = shalt.err (!%p1622_p5)
}
 0x30c   : > { %s1626_s9 = scalar_lea.hbm %s2826_s4, 128  ;;  %s1630_s18 = scalar_lea.hbm %s2877_s3, 256 }
 0x30d   : > { %p1627_p6 = scmp.ne.s32.totalorder %s2826_s4, %s1626_s9  ;;  %p1631_p10 = scmp.lt.u32.totalorder %s2826_s4, %s2877_s3 }
 0x30e   : > { %p1632_p11 = scmp.lt.u32.totalorder %s1630_s18, %s1626_s9  ;;  %p1634_p13 = scmp.lt.u32.totalorder %s1626_s9, %s2826_s4 }
 0x30f   : > { %p1628_p7 = pnand %p1627_p6, %p1755_p4 }
 0x310   : > { %p1633_p12 = por %p1632_p11, %p1631_p10 }
 0x311   : > { %p1629_p9 = pneg %p1628_p7 }
 0x312   : > { %p1635_p0 = por %p1634_p13, %p1633_p12 }
 0x314   : > { %p1636_p1 = pnand %p1635_p0, %p1629_p9 }
 0x316   : > { %1639 = shalt.err (!%p1636_p1)
}
 0x317   : > { %1551 = dma.vmem_to_hbm [thread:$0]  (%p1755_p4), %s2828_s28, 128, %s2826_s4, %s1413_s5  }
 0x318 PF: > { %p1557_p2 = scmp.ge.s32.totalorder %s1690_s17, 2  ;;  %s1438_s23 = sand.u32 1, %s1670_s12  }
 0x319   : > { %s1439_s26 = scalar_lea.sflag [#allocation5], %s1438_s23 }
 0x31a   : > { %p1554_p3 = pnand %p1557_p2, %p1762_p8 }
 0x31c   : > { %1665 = dma.done.wait (!%p1554_p3), %s1439_s26, 128  }
 0x31d   : > { %1667 = vsyncadd (!%p1554_p3), %s1439_s26, 4294967168  ;;  %s16_s17 = sadd.s32 1, %s1690_s17   ;;  %s3060_s12 = smov %s1674_s13 }
 0x31e   : > { %p13_p5 = scmp.ge.s32.totalorder %s16_s17, 4   ;;  %s3061_s13 = smov %s1678_s14 }
 0x31f   : > { %s3062_s14 = smov %s1768_s25  ;;  %s3063_s15 = smov %s1686_s16 }
 0x320   : > { %s3064_s16 = smov %s3066_s20  ;;  %15 = sbr.rel (!%p13_p5) target bundleno = 4 (0x4), region = 75 }
 0x327   :  { %1444 = vsyncpa [#allocation5], 1 }
 0x328   :  { %1446 = vsyncpa [#allocation5 + $0x1], 1 }

</bundles_post_ra>
